<compile_context>
chip_gen: v5e
topology: v5e:2x2
jax: 0.10.0
libtpu: 0.0.40
codegen_flags: <defaults>
</compile_context>

<pallas_src>
import functools

import numpy as np
import jax
import jax.numpy as jnp
from jax.experimental import pallas as pl
from jax.experimental.pallas import tpu as pltpu


def pnn_kernel(num_fields, embed_dim,
               emb_ref, w1_ref, b1_ref, w2_ref, b2_ref, wo_ref, bo_ref, out_ref):
    """One batch tile (lane axis = batch): fused layer-1, 2-layer MLP, sigmoid."""
    F, E = num_fields, embed_dim
    FE = F * E

    e_bf = emb_ref[...]                                    # (FE, TB) bf16
    e32 = e_bf.astype(jnp.float32)                         # products on the VPU in f32
    e2 = jnp.concatenate([e32, e32], axis=0)               # (2*FE, TB) — wrap-around source

    # [e ; prod] slab: slab s, field-slot f holds e_f * e_{(f+s) mod F}, s = 1..F//2.
    pieces = [e_bf]
    for s in range(1, F // 2 + 1):
        rolled = e2[s * E: s * E + FE, :]                  # static sublane slices (8-aligned)
        pieces.append((e32 * rolled).astype(jnp.bfloat16))
    x_all = jnp.concatenate(pieces, axis=0)                # ((1 + F//2)*FE, TB) bf16

    # Layer 1 (Linear + folded eval-BN + folded cross term), bf16 MXU, f32 accumulate.
    h = jnp.dot(w1_ref[...], x_all, preferred_element_type=jnp.float32) + b1_ref[...]
    h = jnp.maximum(h, 0.0).astype(jnp.bfloat16)           # ReLU (Dropout = identity, eval)

    # Layer 2.
    h2 = jnp.dot(w2_ref[...], h, preferred_element_type=jnp.float32) + b2_ref[...]
    h2 = jnp.maximum(h2, 0.0)

    # Output head: sublane reduction instead of an M=1 matmul, then sigmoid.
    logit = jnp.sum(h2 * wo_ref[...], axis=0, keepdims=True) + bo_ref[...]
    out_ref[...] = jax.nn.sigmoid(logit)                   # (1, TB) lane-dense store


def _cross_fold_matrix(num_fields, embed_dim):
    """M: ((F//2)*F*E, P) mapping product columns onto pair columns.

    prod[(s, f, k)] = e_f[k] * e_{(f+s)%F}[k]; summing a pair's slots with weight 1
    (0.5 for the doubly-counted shift F/2 when F is even) reproduces the inner-product
    cross term, so  w1_cross_folded = M @ W1_cross  makes  prod·w1c == cross·W1_cross.
    """
    F, E = num_fields, embed_dim
    pair_idx, p = {}, 0
    for i in range(F - 1):
        for j in range(i + 1, F):
            pair_idx[(i, j)] = p
            p += 1
    n_pairs = p
    n_shifts = F // 2
    M = np.zeros((n_shifts * F * E, n_pairs), np.float32)
    for si in range(n_shifts):
        s = si + 1
        w = 0.5 if (F % 2 == 0 and s == F // 2) else 1.0
        for f in range(F):
            g = (f + s) % F
            col = pair_idx[(min(f, g), max(f, g))]
            base = si * F * E + f * E
            M[base:base + E, col] = w
    return jnp.asarray(M)


def make_params(key, field_dims, embed_dim, mlp_dims):
    num_fields = len(field_dims)
    num_pairs = num_fields * (num_fields - 1) // 2
    in_dim = num_fields * embed_dim + num_pairs
    dims = [in_dim] + list(mlp_dims)

    keys = jax.random.split(key, 4 + 6 * len(mlp_dims) + 2)
    k = iter(keys)

    params = {
        "embed_table": 0.1 * jax.random.normal(
            next(k), (sum(field_dims), embed_dim), jnp.float32),
    }
    layers = []
    for li in range(len(mlp_dims)):
        d_in, d_out = dims[li], dims[li + 1]
        w = jax.random.normal(next(k), (d_in, d_out), jnp.float32) / jnp.sqrt(d_in)
        b = 0.01 * jax.random.normal(next(k), (1, d_out), jnp.float32)
        gamma = 1.0 + 0.05 * jax.random.normal(next(k), (1, d_out), jnp.float32)
        beta = 0.05 * jax.random.normal(next(k), (1, d_out), jnp.float32)
        rmean = 0.05 * jax.random.normal(next(k), (1, d_out), jnp.float32)
        rvar = 1.0 + 0.1 * jax.random.uniform(next(k), (1, d_out), jnp.float32)
        # Fold eval-mode BatchNorm running stats into per-channel scale / shift.
        scale = gamma / jnp.sqrt(rvar + 1e-5)
        shift = beta - rmean * scale
        layers.append((w, b, scale, shift))
    params["layers"] = layers
    params["wo"] = jax.random.normal(next(k), (dims[-1], 1), jnp.float32) / jnp.sqrt(dims[-1])
    params["bo"] = 0.01 * jax.random.normal(next(k), (1, 1), jnp.float32)
    return params


def prepare_pnn_params(params, field_dims, embed_dim):
    """One-time host-side folds: eval-BN into the Linears, pair segment-sum into W1,
    layer-1 fusion, transposes and bf16 casts of the MXU operands."""
    num_fields = len(field_dims)
    FE = num_fields * embed_dim
    (w1, b1, s1, sh1), (w2, b2, s2, sh2) = params["layers"]

    w1f = w1 * s1                                           # fold BN scale into Linear
    b1f = b1 * s1 + sh1
    w1e = w1f[:FE]                                          # (F*E, H1)
    w1c = _cross_fold_matrix(num_fields, embed_dim) @ w1f[FE:]   # ((F//2)*F*E, H1)
    w1_all_T = jnp.concatenate([w1e, w1c], axis=0).T.astype(jnp.bfloat16)  # (H1, 640)

    w2f = w2 * s2
    b2f = b2 * s2 + sh2

    return {
        "offsets": jnp.asarray([0] + list(np.cumsum(field_dims[:-1])), jnp.int32),
        "table": params["embed_table"],                     # (vocab, E) f32
        "w1T": w1_all_T,                                    # (H1, (1+F//2)*F*E) bf16
        "b1": b1f.T,                                        # (H1, 1) f32
        "w2T": w2f.T.astype(jnp.bfloat16),                  # (H2, H1) bf16
        "b2": b2f.T,                                        # (H2, 1) f32
        "wo": params["wo"],                                 # (H2, 1) f32 (VPU head)
        "bo": params["bo"],                                 # (1, 1) f32
    }


def pnn_forward(x_idx, prep, *, num_fields, embed_dim, block_rows=1024):
    """x_idx: int32 (B, F) field-local indices -> sigmoid click prob (B,)."""
    FE = num_fields * embed_dim
    B = x_idx.shape[0]
    H1, K_all = prep["w1T"].shape
    H2 = prep["w2T"].shape[0]

    # FeaturesEmbedding (XLA glue): per-field offsets + shared-table gather, shipped to the
    # kernel transposed and lane-dense as a bf16 (F*E, B) slab (batch on the lane axis).
    gidx = x_idx + prep["offsets"][None, :]
    emb = prep["table"][gidx]                               # (B, F, E) f32
    emb_t = emb.reshape(B, FE).astype(jnp.bfloat16).T       # (F*E, B) bf16

    # Batch tiling on the lane axis: TB lanes per grid step, >= 2 steps when possible
    # (v7x has 2 TensorCores), TB a multiple of 128 for dense stores/loads.
    TB = min(block_rows, B)
    if B >= 256:
        TB = min(TB, pl.cdiv(B, 2))
    TB = max(128, (TB // 128) * 128)
    nb = pl.cdiv(B, TB)
    Bp = nb * TB
    if Bp != B:
        emb_t = jnp.pad(emb_t, ((0, 0), (0, Bp - B)))

    def resident(a):   # full-array block, constant index_map -> stays VMEM-resident
        return pl.BlockSpec(a.shape, lambda i: (0, 0))

    cost = pl.CostEstimate(
        flops=2 * Bp * (K_all * H1 + H1 * H2 + H2) + Bp * (K_all - FE),
        transcendentals=Bp,
        bytes_accessed=(emb_t.size * 2 + Bp * 4
                        + prep["w1T"].size * 2 + prep["w2T"].size * 2
                        + (2 * H1 + 2 * H2 + 1) * 4),
    )

    out = pl.pallas_call(
        functools.partial(pnn_kernel, num_fields, embed_dim),
        out_shape=jax.ShapeDtypeStruct((1, Bp), jnp.float32),
        grid=(nb,),
        in_specs=[pl.BlockSpec((FE, TB), lambda i: (0, i)),   # streamed emb tile (lanes=batch)
                  resident(prep["w1T"]), resident(prep["b1"]),
                  resident(prep["w2T"]), resident(prep["b2"]),
                  resident(prep["wo"]), resident(prep["bo"])],
        out_specs=pl.BlockSpec((1, TB), lambda i: (0, i)),    # lane-dense output block
        compiler_params=pltpu.CompilerParams(
            dimension_semantics=("parallel",)),
        cost_estimate=cost,
    )(emb_t, prep["w1T"], prep["b1"], prep["w2T"], prep["b2"],
      prep["wo"], prep["bo"])
    return out[0, :B]                                        # (B,)


def pnn_reference(x_idx, params, field_dims, embed_dim):
    """Pure-JAX reference mirroring the torch forward (eval mode), f32 weights.

    Uses the same bf16-rounded embeddings the kernel receives so the comparison isolates
    the kernel's algebraic refactor (BN fold, cross-term fold, bf16 MXU operands)."""
    num_fields = len(field_dims)
    B = x_idx.shape[0]
    offsets = jnp.asarray([0] + list(np.cumsum(field_dims[:-1])), jnp.int32)
    emb = params["embed_table"][x_idx + offsets[None, :]]    # (B, F, E)
    emb = emb.astype(jnp.bfloat16).astype(jnp.float32)
    row, col = [], []
    for i in range(num_fields - 1):
        for j in range(i + 1, num_fields):
            row.append(i)
            col.append(j)
    cross = jnp.sum(emb[:, jnp.asarray(row)] * emb[:, jnp.asarray(col)], axis=2)
    h = jnp.concatenate([emb.reshape(B, -1), cross], axis=1)
    for (w, b, s, sh) in params["layers"]:
        h = (h @ w + b) * s + sh                             # Linear -> eval BatchNorm
        h = jnp.maximum(h, 0.0)                              # ReLU (Dropout identity)
    logit = h @ params["wo"] + params["bo"]
    return jax.nn.sigmoid(logit[:, 0])


if __name__ == "__main__":
    field_dims = [11, 17, 23, 31, 13, 19, 29, 37]   # num_fields = 8, vocab = 180
    embed_dim = 16                                   # F*E = 128 -> one sublane-dense column
    mlp_dims = (32, 32)
    batch = 1024                                     # 2 grid steps (TB = 512)

    key = jax.random.PRNGKey(0)
    k_param, k_x = jax.random.split(key)
    params = make_params(k_param, field_dims, embed_dim, mlp_dims)
    prep = prepare_pnn_params(params, field_dims, embed_dim)   # host-side folds, done once

    # Long tensor of size (batch_size, num_fields), field-local indices.
    maxvals = jnp.asarray(field_dims, jnp.int32)
    x_idx = jax.random.randint(
        k_x, (batch, len(field_dims)), 0, 2**20, dtype=jnp.int32) % maxvals[None, :]

    fwd = jax.jit(functools.partial(
        pnn_forward, num_fields=len(field_dims), embed_dim=embed_dim, block_rows=1024))
    out = jax.block_until_ready(fwd(x_idx, prep))

    ref = pnn_reference(x_idx, params, field_dims, embed_dim)
    assert out.shape == (batch,)
    max_err = float(jnp.max(jnp.abs(out - ref)))
    assert jnp.allclose(out, ref, atol=5e-3, rtol=5e-3), max_err

    print("KERNEL_OK")
</pallas_src>

<mosaic_0001>
module attributes {stable_mosaic.version = 11 : i64} {
  func.func @pnn_kernel(%arg0: i32, %arg1: memref<128x512xbf16, #tpu.memory_space<vmem>>, %arg2: memref<32x640xbf16, #tpu.memory_space<vmem>>, %arg3: memref<32x1xf32, #tpu.memory_space<vmem>>, %arg4: memref<32x32xbf16, #tpu.memory_space<vmem>>, %arg5: memref<32x1xf32, #tpu.memory_space<vmem>>, %arg6: memref<32x1xf32, #tpu.memory_space<vmem>>, %arg7: memref<1x1xf32, #tpu.memory_space<vmem>>, %arg8: memref<1x512xf32, #tpu.memory_space<vmem>>) attributes {dimension_semantics = [#tpu.dimension_semantics<parallel>], iteration_bounds = array<i64: 2>, scalar_prefetch = 0 : i64, scratch_operands = 0 : i64, tpu.core_type = #tpu.core_type<tc>, window_params = [{transform_indices = @transform_0, window_bounds = array<i64: 128, 512>}, {pipeline_mode = #tpu.pipeline_mode<synchronous>, transform_indices = @transform_1, window_bounds = array<i64: 32, 640>}, {pipeline_mode = #tpu.pipeline_mode<synchronous>, transform_indices = @transform_2, window_bounds = array<i64: 32, 1>}, {pipeline_mode = #tpu.pipeline_mode<synchronous>, transform_indices = @transform_3, window_bounds = array<i64: 32, 32>}, {pipeline_mode = #tpu.pipeline_mode<synchronous>, transform_indices = @transform_4, window_bounds = array<i64: 32, 1>}, {pipeline_mode = #tpu.pipeline_mode<synchronous>, transform_indices = @transform_5, window_bounds = array<i64: 32, 1>}, {pipeline_mode = #tpu.pipeline_mode<synchronous>, transform_indices = @transform_6, window_bounds = array<i64: 1, 1>}, {transform_indices = @transform_7, window_bounds = array<i64: 1, 512>}]} {
    %c0 = arith.constant 0 : index
    %c0_0 = arith.constant 0 : index
    %0 = vector.load %arg1[%c0, %c0_0] : memref<128x512xbf16, #tpu.memory_space<vmem>>, vector<128x512xbf16>
    %1 = arith.extf %0 : vector<128x512xbf16> to vector<128x512xf32>
    %2 = tpu.concatenate %1, %1 in 0 : vector<128x512xf32>, vector<128x512xf32> -> vector<256x512xf32>
    %3 = vector.extract_strided_slice %2 {offsets = [16, 0], sizes = [128, 512], strides = [1, 1]} : vector<256x512xf32> to vector<128x512xf32>
    %4 = arith.mulf %1, %3 : vector<128x512xf32>
    %5 = arith.truncf %4 : vector<128x512xf32> to vector<128x512xbf16>
    %6 = vector.extract_strided_slice %2 {offsets = [32, 0], sizes = [128, 512], strides = [1, 1]} : vector<256x512xf32> to vector<128x512xf32>
    %7 = arith.mulf %1, %6 : vector<128x512xf32>
    %8 = arith.truncf %7 : vector<128x512xf32> to vector<128x512xbf16>
    %9 = vector.extract_strided_slice %2 {offsets = [48, 0], sizes = [128, 512], strides = [1, 1]} : vector<256x512xf32> to vector<128x512xf32>
    %10 = arith.mulf %1, %9 : vector<128x512xf32>
    %11 = arith.truncf %10 : vector<128x512xf32> to vector<128x512xbf16>
    %12 = vector.extract_strided_slice %2 {offsets = [64, 0], sizes = [128, 512], strides = [1, 1]} : vector<256x512xf32> to vector<128x512xf32>
    %13 = arith.mulf %1, %12 : vector<128x512xf32>
    %14 = arith.truncf %13 : vector<128x512xf32> to vector<128x512xbf16>
    %15 = tpu.concatenate %0, %5, %8, %11, %14 in 0 : vector<128x512xbf16>, vector<128x512xbf16>, vector<128x512xbf16>, vector<128x512xbf16>, vector<128x512xbf16> -> vector<640x512xbf16>
    %c0_1 = arith.constant 0 : index
    %c0_2 = arith.constant 0 : index
    %16 = vector.load %arg2[%c0_1, %c0_2] : memref<32x640xbf16, #tpu.memory_space<vmem>>, vector<32x640xbf16>
    %cst = arith.constant dense<0.000000e+00> : vector<32x512xf32>
    %17 = tpu.matmul %16, %15, %cst {dimension_numbers = #tpu.dot_dimension_numbers<[1], [0], [0], [1], [0, 0, 1, 1], [], []>} : vector<32x640xbf16>, vector<640x512xbf16>, vector<32x512xf32> -> vector<32x512xf32>
    %c0_3 = arith.constant 0 : index
    %c0_4 = arith.constant 0 : index
    %18 = vector.load %arg3[%c0_3, %c0_4] : memref<32x1xf32, #tpu.memory_space<vmem>>, vector<32x1xf32>
    %19 = vector.broadcast %18 : vector<32x1xf32> to vector<32x512xf32>
    %20 = arith.addf %17, %19 : vector<32x512xf32>
    %cst_5 = arith.constant 0.000000e+00 : f32
    %21 = vector.broadcast %cst_5 : f32 to vector<32x512xf32>
    %22 = arith.maximumf %20, %21 : vector<32x512xf32>
    %23 = arith.truncf %22 : vector<32x512xf32> to vector<32x512xbf16>
    %c0_6 = arith.constant 0 : index
    %c0_7 = arith.constant 0 : index
    %24 = vector.load %arg4[%c0_6, %c0_7] : memref<32x32xbf16, #tpu.memory_space<vmem>>, vector<32x32xbf16>
    %cst_8 = arith.constant dense<0.000000e+00> : vector<32x512xf32>
    %25 = tpu.matmul %24, %23, %cst_8 {dimension_numbers = #tpu.dot_dimension_numbers<[1], [0], [0], [1], [0, 0, 1, 1], [], []>} : vector<32x32xbf16>, vector<32x512xbf16>, vector<32x512xf32> -> vector<32x512xf32>
    %c0_9 = arith.constant 0 : index
    %c0_10 = arith.constant 0 : index
    %26 = vector.load %arg5[%c0_9, %c0_10] : memref<32x1xf32, #tpu.memory_space<vmem>>, vector<32x1xf32>
    %27 = vector.broadcast %26 : vector<32x1xf32> to vector<32x512xf32>
    %28 = arith.addf %25, %27 : vector<32x512xf32>
    %cst_11 = arith.constant 0.000000e+00 : f32
    %29 = vector.broadcast %cst_11 : f32 to vector<32x512xf32>
    %30 = arith.maximumf %28, %29 : vector<32x512xf32>
    %c0_12 = arith.constant 0 : index
    %c0_13 = arith.constant 0 : index
    %31 = vector.load %arg6[%c0_12, %c0_13] : memref<32x1xf32, #tpu.memory_space<vmem>>, vector<32x1xf32>
    %32 = vector.broadcast %31 : vector<32x1xf32> to vector<32x512xf32>
    %33 = arith.mulf %30, %32 : vector<32x512xf32>
    %cst_14 = arith.constant dense<0.000000e+00> : vector<512xf32>
    %34 = vector.multi_reduction <add>, %33, %cst_14 [0] : vector<32x512xf32> to vector<512xf32>
    %35 = vector.shape_cast %34 : vector<512xf32> to vector<1x512xf32>
    %c0_15 = arith.constant 0 : index
    %c0_16 = arith.constant 0 : index
    %36 = vector.load %arg7[%c0_15, %c0_16] : memref<1x1xf32, #tpu.memory_space<vmem>>, vector<1x1xf32>
    %37 = vector.broadcast %36 : vector<1x1xf32> to vector<1x512xf32>
    %38 = arith.addf %35, %37 : vector<1x512xf32>
    %39 = arith.negf %38 : vector<1x512xf32>
    %40 = math.exp %39 : vector<1x512xf32>
    %cst_17 = arith.constant 1.000000e+00 : f32
    %41 = vector.broadcast %cst_17 : f32 to vector<1x512xf32>
    %42 = arith.addf %41, %40 : vector<1x512xf32>
    %43 = arith.divf %41, %42 : vector<1x512xf32>
    %c0_18 = arith.constant 0 : index
    %c0_19 = arith.constant 0 : index
    %44 = vector.load %arg8[%c0_18, %c0_19] : memref<1x512xf32, #tpu.memory_space<vmem>>, vector<1x512xf32>
    tpu.vector_store %arg8[%c0_18, %c0_19], %43 {strides = array<i32>} : memref<1x512xf32, #tpu.memory_space<vmem>>, vector<1x512xf32>,
    return
  }
  func.func @transform_0(%arg0: i32) -> (i32, i32) {
    %c0_i32 = arith.constant 0 : i32
    %c0_i32_0 = arith.constant 0 : i32
    return %c0_i32, %arg0 : i32, i32
  }
  func.func @transform_1(%arg0: i32) -> (i32, i32) {
    %c0_i32 = arith.constant 0 : i32
    %c0_i32_0 = arith.constant 0 : i32
    %c0_i32_1 = arith.constant 0 : i32
    return %c0_i32, %c0_i32_0 : i32, i32
  }
  func.func @transform_2(%arg0: i32) -> (i32, i32) {
    %c0_i32 = arith.constant 0 : i32
    %c0_i32_0 = arith.constant 0 : i32
    %c0_i32_1 = arith.constant 0 : i32
    return %c0_i32, %c0_i32_0 : i32, i32
  }
  func.func @transform_3(%arg0: i32) -> (i32, i32) {
    %c0_i32 = arith.constant 0 : i32
    %c0_i32_0 = arith.constant 0 : i32
    %c0_i32_1 = arith.constant 0 : i32
    return %c0_i32, %c0_i32_0 : i32, i32
  }
  func.func @transform_4(%arg0: i32) -> (i32, i32) {
    %c0_i32 = arith.constant 0 : i32
    %c0_i32_0 = arith.constant 0 : i32
    %c0_i32_1 = arith.constant 0 : i32
    return %c0_i32, %c0_i32_0 : i32, i32
  }
  func.func @transform_5(%arg0: i32) -> (i32, i32) {
    %c0_i32 = arith.constant 0 : i32
    %c0_i32_0 = arith.constant 0 : i32
    %c0_i32_1 = arith.constant 0 : i32
    return %c0_i32, %c0_i32_0 : i32, i32
  }
  func.func @transform_6(%arg0: i32) -> (i32, i32) {
    %c0_i32 = arith.constant 0 : i32
    %c0_i32_0 = arith.constant 0 : i32
    %c0_i32_1 = arith.constant 0 : i32
    return %c0_i32, %c0_i32_0 : i32, i32
  }
  func.func @transform_7(%arg0: i32) -> (i32, i32) {
    %c0_i32 = arith.constant 0 : i32
    %c0_i32_0 = arith.constant 0 : i32
    return %c0_i32, %arg0 : i32, i32
  }
}

</mosaic_0001>

<bundles_post_ra>
// kernel: pnn_forward.1
= control target key start
LH: loop header
LB: loop body
LE: loop exit
PB: predicated region body
PF: predicated region fallthrough
CT: control target
= control target key end

     0   :  { %s4618_s0 = inlined_call_operand.vmem [shape: bf16[128,1024], index: 0, kind: input, shape index: {}]   ;;  %s4619_s1 = inlined_call_operand.vmem [shape: bf16[32,640], index: 1, kind: input, shape index: {}]   ;;  %s4620_s2 = inlined_call_operand.vmem [shape: f32[32,1], index: 2, kind: input, shape index: {}]   ;;  %s4621_s3 = inlined_call_operand.vmem [shape: bf16[32,32], index: 3, kind: input, shape index: {}]   ;;  %s4622_s4 = inlined_call_operand.vmem [shape: f32[32,1], index: 4, kind: input, shape index: {}]   ;;  %s4623_s5 = inlined_call_operand.vmem [shape: f32[32,1], index: 5, kind: input, shape index: {}]   ;;  %s4624_s6 = inlined_call_operand.<no memory space> [shape: f32[1,1], index: 6, kind: input, shape index: {}]   ;;  %s4625_s7 = inlined_call_operand.hbm [shape: f32[1,1024], index: 7, kind: output, shape index: {}]  }
   0x1   :  { %v12_v0 = vstv %s4624_s6 }
   0x2   :  { %13 = vst [vmem:[#allocation2] sm:$0x1] %v12_v0 }
   0x3   :  { %14 = vsyncpa [#allocation5], 0 }
   0x4   :  { %16 = vsyncpa [#allocation5 + $0x1], 0  ;;  %s2821_s26 = smov 0   ;;  %s2823_s27 = smov 0  }
   0x5   :  { %s2825_s28 = smov 0   ;;  %s2827_s29 = smov 0  }
   0x6 LB: > { %s2407_s6 = sadd.s32 4294967295, %s2775_s29   ;;  %s2408_s30 = sadd.s32 4294967294, %s2775_s29   ;;  %s2775_s29 = sphi %s2827_s29, %s4865_s29   ;;  %s2771_s28 = sphi %s2825_s28, %s4864_s28   ;;  %s2767_s27 = sphi %s2823_s27, %s4863_s27   ;;  %s2763_s26 = sphi %s2821_s26, %s4862_s26  }
   0x7   : > { %s2844_s8 = sadd.s32 1, %s2775_s29   ;;  %s29_s9 = sadd.s32 1, %s2771_s28 }
   0x8   : > { %s26_s10 = ssub.s32 %s2775_s29, %s2844_s8  ;;  %p36_p0 = scmp.ne.s32.totalorder %s2771_s28, %s2767_s27 }
   0x9   : > { %p27_p1 = scmp.eq.s32.totalorder %s26_s10, 0  ;;  %p37_p2 = scmp.eq.s32.totalorder %s2775_s29, 0 }
   0xa   : > { %p192_p3 = scmp.eq.s32.totalorder %s2407_s6, 1  ;;  %p197_p4 = scmp.ne.s32.totalorder %s2767_s27, %s2763_s26 }
   0xb   : > { %s2857_s11 = scalar_select %p27_p1, %s2771_s28, %s29_s9  }
   0xc   : > { %p38_p5 = por %p37_p2, %p36_p0  ;;  %p2859_p6 = por %p192_p3, %p36_p0 }
   0xd   : > { %p198_p7 = scmp.eq.s32.totalorder %s2408_s30, 1  ;;  %p2410_p9 = scmp.ge.s32.totalorder %s2775_s29, 2 }
   0xf   : > { %p2863_p8 = por %p198_p7, %p197_p4  ;;  %232 = sbr.rel (%p2410_p9) target bundleno = 56 (0x38), region = 40 }
  0x14   : > { %235 = sbr.rel (!%p38_p5) target bundleno = 56 (0x38), region = 44  ;;  %s237_s14 = sand.u32 (%p38_p5), 1, %s2771_s28  }
  0x15   : > { %s2609_s15 = sshll.u32 (%p38_p5), %s2775_s29, 4  ;;  %s2411_s16 = sshll.u32 (%p38_p5), %s237_s14, 8 }
  0x16   : > { %s2875_s19 = scalar_lea.vmem (%p38_p5), %s4618_s0, %s2609_s15  ;;  %s2880_s20 = scalar_lea.vmem (%p38_p5), [#allocation3], %s2411_s16 }
  0x17   : > { %v255_v1 = vld [vmem:[%s2875_s19] sm:$0xff] (%p38_p5)  ;;  %v257_v2 = vld [vmem:[%s2875_s19 + $0x8] sm:$0xff] (%p38_p5) }
  0x18   : > { %v259_v3 = vld [vmem:[%s2875_s19 + $0x20] sm:$0xff] (%p38_p5)  ;;  %256 = vst [vmem:[%s2880_s20] sm:$0xff] (%p38_p5), %v255_v1  ;;  %v261_v4 = vld [vmem:[%s2875_s19 + $0x28] sm:$0xff] (%p38_p5) }
  0x19   : > { %258 = vst [vmem:[%s2880_s20 + $0x8] sm:$0xff] %v257_v2  ;;  %v263_v5 = vld [vmem:[%s2875_s19 + $0x40] sm:$0xff]  ;;  %v265_v6 = vld [vmem:[%s2875_s19 + $0x48] sm:$0xff] }
  0x1a   : > { %260 = vst [vmem:[%s2880_s20 + $0x10] sm:$0xff] %v259_v3  ;;  %v267_v7 = vld [vmem:[%s2875_s19 + $0x60] sm:$0xff]  ;;  %v269_v8 = vld [vmem:[%s2875_s19 + $0x68] sm:$0xff] }
  0x1b   : > { %262 = vst [vmem:[%s2880_s20 + $0x18] sm:$0xff] %v261_v4  ;;  %v271_v9 = vld [vmem:[%s2875_s19 + $0x80] sm:$0xff]  ;;  %v273_v10 = vld [vmem:[%s2875_s19 + $0x88] sm:$0xff] }
  0x1c   : > { %264 = vst [vmem:[%s2880_s20 + $0x20] sm:$0xff] %v263_v5  ;;  %v275_v11 = vld [vmem:[%s2875_s19 + $0xa0] sm:$0xff]  ;;  %v277_v12 = vld [vmem:[%s2875_s19 + $0xa8] sm:$0xff] }
  0x1d   : > { %266 = vst [vmem:[%s2880_s20 + $0x28] sm:$0xff] %v265_v6  ;;  %v279_v13 = vld [vmem:[%s2875_s19 + $0xc0] sm:$0xff]  ;;  %v281_v14 = vld [vmem:[%s2875_s19 + $0xc8] sm:$0xff] }
  0x1e   : > { %268 = vst [vmem:[%s2880_s20 + $0x30] sm:$0xff] %v267_v7  ;;  %v283_v15 = vld [vmem:[%s2875_s19 + $0xe0] sm:$0xff]  ;;  %v285_v16 = vld [vmem:[%s2875_s19 + $0xe8] sm:$0xff] }
  0x1f   : > { %270 = vst [vmem:[%s2880_s20 + $0x38] sm:$0xff] %v269_v8  ;;  %v287_v17 = vld [vmem:[%s2875_s19 + $0x100] sm:$0xff]  ;;  %v289_v18 = vld [vmem:[%s2875_s19 + $0x108] sm:$0xff] }
  0x20   : > { %272 = vst [vmem:[%s2880_s20 + $0x40] sm:$0xff] %v271_v9  ;;  %v291_v19 = vld [vmem:[%s2875_s19 + $0x120] sm:$0xff]  ;;  %v293_v20 = vld [vmem:[%s2875_s19 + $0x128] sm:$0xff] }
  0x21   : > { %274 = vst [vmem:[%s2880_s20 + $0x48] sm:$0xff] %v273_v10  ;;  %v295_v21 = vld [vmem:[%s2875_s19 + $0x140] sm:$0xff]  ;;  %v297_v22 = vld [vmem:[%s2875_s19 + $0x148] sm:$0xff] }
  0x22   : > { %276 = vst [vmem:[%s2880_s20 + $0x50] sm:$0xff] %v275_v11  ;;  %v299_v23 = vld [vmem:[%s2875_s19 + $0x160] sm:$0xff]  ;;  %v301_v24 = vld [vmem:[%s2875_s19 + $0x168] sm:$0xff] }
  0x23   : > { %278 = vst [vmem:[%s2880_s20 + $0x58] sm:$0xff] %v277_v12  ;;  %v303_v25 = vld [vmem:[%s2875_s19 + $0x180] sm:$0xff]  ;;  %v305_v26 = vld [vmem:[%s2875_s19 + $0x188] sm:$0xff] }
  0x24   : > { %280 = vst [vmem:[%s2880_s20 + $0x60] sm:$0xff] %v279_v13  ;;  %v307_v27 = vld [vmem:[%s2875_s19 + $0x1a0] sm:$0xff]  ;;  %v309_v28 = vld [vmem:[%s2875_s19 + $0x1a8] sm:$0xff] }
  0x25   : > { %282 = vst [vmem:[%s2880_s20 + $0x68] sm:$0xff] %v281_v14  ;;  %v311_v29 = vld [vmem:[%s2875_s19 + $0x1c0] sm:$0xff]  ;;  %v313_v30 = vld [vmem:[%s2875_s19 + $0x1c8] sm:$0xff] }
  0x26   : > { %284 = vst [vmem:[%s2880_s20 + $0x70] sm:$0xff] %v283_v15  ;;  %v315_v31 = vld [vmem:[%s2875_s19 + $0x1e0] sm:$0xff]  ;;  %v317_v32 = vld [vmem:[%s2875_s19 + $0x1e8] sm:$0xff] }
  0x27   : > { %286 = vst [vmem:[%s2880_s20 + $0x78] sm:$0xff] %v285_v16 }
  0x28   : > { %288 = vst [vmem:[%s2880_s20 + $0x80] sm:$0xff] %v287_v17 }
  0x29   : > { %290 = vst [vmem:[%s2880_s20 + $0x88] sm:$0xff] %v289_v18 }
  0x2a   : > { %292 = vst [vmem:[%s2880_s20 + $0x90] sm:$0xff] %v291_v19 }
  0x2b   : > { %294 = vst [vmem:[%s2880_s20 + $0x98] sm:$0xff] %v293_v20 }
  0x2c   : > { %296 = vst [vmem:[%s2880_s20 + $0xa0] sm:$0xff] %v295_v21 }
  0x2d   : > { %298 = vst [vmem:[%s2880_s20 + $0xa8] sm:$0xff] %v297_v22 }
  0x2e   : > { %300 = vst [vmem:[%s2880_s20 + $0xb0] sm:$0xff] %v299_v23 }
  0x2f   : > { %302 = vst [vmem:[%s2880_s20 + $0xb8] sm:$0xff] %v301_v24 }
  0x30   : > { %304 = vst [vmem:[%s2880_s20 + $0xc0] sm:$0xff] %v303_v25 }
  0x31   : > { %306 = vst [vmem:[%s2880_s20 + $0xc8] sm:$0xff] %v305_v26 }
  0x32   : > { %308 = vst [vmem:[%s2880_s20 + $0xd0] sm:$0xff] %v307_v27 }
  0x33   : > { %310 = vst [vmem:[%s2880_s20 + $0xd8] sm:$0xff] %v309_v28 }
  0x34   : > { %312 = vst [vmem:[%s2880_s20 + $0xe0] sm:$0xff] %v311_v29 }
  0x35   : > { %314 = vst [vmem:[%s2880_s20 + $0xe8] sm:$0xff] %v313_v30 }
  0x36   : > { %316 = vst [vmem:[%s2880_s20 + $0xf0] sm:$0xff] %v315_v31 }
  0x37   : > { %318 = vst [vmem:[%s2880_s20 + $0xf8] sm:$0xff] %v317_v32 }
  0x38 PF: > { %p2414_p10 = scmp.ge.s32.totalorder %s2775_s29, 1  ;;  %p323_p11 = scmp.lt.s32.totalorder %s2775_s29, 3 }
  0x3a   : > { %p324_p12 = pnand %p2414_p10, %p323_p11 }
  0x3c   : > { %327 = sbr.rel (%p324_p12) target bundleno = 673 (0x2a1), region = 67 }
  0x41   : > { %s2946_s21 = sand.u32 1, %s2767_s27   ;;  %vm2046_vm0 = vcmask 261120   ;;  %s4567_s30 = sshll.u32 %s2407_s6, 2 }
  0x42   : > { %s2415_s22 = sshll.u32 %s2946_s21, 8  ;;  %s2416_s25 = sshll.u32 %s2946_s21, 2 }
  0x43   : > { %s2949_s23 = scalar_lea.vmem [#allocation3], %s2415_s22  ;;  %s2338_s10 = scalar_lea.hbm %s4625_s7, %s4567_s30 }
  0x44   : > { %v2531_v33 = vld [vmem:[%s2949_s23 + $0xe0] sm:$0xf]  ;;  %v2640_v34 = vld [vmem:[%s2949_s23 + $0xec] sm:$0xf0]  ;;  %s360_s14 = scalar_lea.vmem [#allocation4], %s2416_s25  ;;  %s2342_s16 = sshll.u32 %s2338_s10, 4  ;;  %s2343_s16 = int_to_ptr.hbm [resolvable:$true] %s2342_s16 }
  0x45   : > { %v2515_v35 = vld [vmem:[%s2949_s23 + $0xc0] sm:$0xf]  ;;  %v2532_v36 = vor.u32 %v2640_v34, %v2531_v33  ;;  %v2636_v37 = vld [vmem:[%s2949_s23 + $0xcc] sm:$0xf0]  ;;  %s2340_s15 = sshll.u32 %s360_s14, 4  ;;  %s2328_s17 = scalar_lea.sflag [#allocation5], %s2946_s21  ;;  %s2341_s15 = int_to_ptr.vmem [resolvable:$true] %s2340_s15 }
  0x46   : > { %v2499_v38 = vld [vmem:[%s2949_s23 + $0xa0] sm:$0xf]  ;;  %v2632_v39 = vld [vmem:[%s2949_s23 + $0xac] sm:$0xf0]  ;;  %v2516_v40 = vor.u32 %v2636_v37, %v2515_v35  ;;  %s2733_s22 = scalar_lea.hbm %s4625_s7, 8 }
  0x47   : > { %v2500_v41 = vor.u32 %v2632_v39, %v2499_v38  ;;  %v364_v42 = vld [vmem:[%s2949_s23] sm:$0xff]  ;;  %v366_v43 = vld [vmem:[%s2949_s23 + $0x10] sm:$0xff]  ;;  %1604 = vmatpush.bf16.msra.mxu0 %v2532_v36 }
  0x48   : > { %v392_v44 = vld [vmem:[%s2949_s23 + $0xe0] sm:$0xff]  ;;  %v394_v45 = vld [vmem:[%s2949_s23 + $0xf0] sm:$0xff]  ;;  %v2961_v46 = vunpack.c.l.bf16 %v364_v42  ;;  %v2963_v47 = vunpack.c.h.bf16 %v364_v42  ;;  %v2965_v48 = vunpack.c.l.bf16 %v366_v43  ;;  %v2967_v49 = vunpack.c.h.bf16 %v366_v43 }
  0x49   : > { %v368_v50 = vld [vmem:[%s2949_s23 + $0x20] sm:$0xff]  ;;  %v370_v51 = vld [vmem:[%s2949_s23 + $0x30] sm:$0xff]  ;;  %v2971_v52 = vunpack.c.l.bf16 %v392_v44  ;;  %v2973_v53 = vunpack.c.h.bf16 %v392_v44  ;;  %v2975_v54 = vunpack.c.l.bf16 %v394_v45  ;;  %v2977_v55 = vunpack.c.h.bf16 %v394_v45 }
  0x4a   : > { %v2979_v56 = vunpack.c.l.bf16 %v368_v50  ;;  %v2981_v57 = vunpack.c.h.bf16 %v368_v50  ;;  %v2983_v58 = vunpack.c.l.bf16 %v370_v51  ;;  %v2985_v59 = vunpack.c.h.bf16 %v370_v51  ;;  %v372_v60 = vld [vmem:[%s2949_s23 + $0x40] sm:$0xff]  ;;  %v374_v1 = vld [vmem:[%s2949_s23 + $0x50] sm:$0xff] }
  0x4b   : > { %v516_v61 = vmul.f32 %v2971_v52, %v2961_v46  ;;  %v517_v62 = vmul.f32 %v2973_v53, %v2963_v47  ;;  %v520_v63 = vmul.f32 %v2975_v54, %v2965_v48  ;;  %v521_v0 = vmul.f32 %v2977_v55, %v2967_v49  ;;  %1605 = vmatpush.bf16.msra.mxu0 %v2516_v40  ;;  %v2483_v14 = vld [vmem:[%s2949_s23 + $0x80] sm:$0xf]  ;;  %v2628_v15 = vld [vmem:[%s2949_s23 + $0x8c] sm:$0xf0] }
  0x4c   : > { %v612_v2 = vmul.f32 %v2971_v52, %v2979_v56  ;;  %v613_v3 = vmul.f32 %v2973_v53, %v2981_v57  ;;  %v616_v4 = vmul.f32 %v2975_v54, %v2983_v58  ;;  %v617_v5 = vmul.f32 %v2977_v55, %v2985_v59  ;;  %v388_v16 = vld [vmem:[%s2949_s23 + $0xc0] sm:$0xff]  ;;  %v390_v21 = vld [vmem:[%s2949_s23 + $0xd0] sm:$0xff] }
  0x4d   : > { %v3005_v6 = vpack.c.bf16 %v517_v62, %v516_v61  ;;  %v3007_v7 = vpack.c.bf16 %v521_v0, %v520_v63  ;;  %v3009_v8 = vunpack.c.l.bf16 %v372_v60  ;;  %v3011_v9 = vunpack.c.h.bf16 %v372_v60  ;;  %v2467_v50 = vld [vmem:[%s2949_s23 + $0x60] sm:$0xf]  ;;  %v2624_v51 = vld [vmem:[%s2949_s23 + $0x6c] sm:$0xf0] }
  0x4e   : > { %v3013_v10 = vpack.c.bf16 %v613_v3, %v612_v2  ;;  %v3015_v11 = vpack.c.bf16 %v617_v5, %v616_v4  ;;  %v3017_v12 = vunpack.c.l.bf16 %v374_v1  ;;  %v3019_v13 = vunpack.c.h.bf16 %v374_v1  ;;  %v384_v0 = vld [vmem:[%s2949_s23 + $0xa0] sm:$0xff]  ;;  %v386_v5 = vld [vmem:[%s2949_s23 + $0xb0] sm:$0xff] }
  0x4f   : > { %v1044_v17 = vunpack.c.l.b16 %v3005_v6  ;;  %v1048_v18 = vunpack.c.l.b16 %v3007_v7  ;;  %v708_v19 = vmul.f32 %v2971_v52, %v3009_v8  ;;  %v709_v20 = vmul.f32 %v2973_v53, %v3011_v9  ;;  %1606 = vmatpush.bf16.msra.mxu0 %v2500_v41  ;;  %v376_v39 = vld [vmem:[%s2949_s23 + $0x60] sm:$0xff] }
  0x50   : > { %v1204_v22 = vunpack.c.l.b16 %v3013_v10  ;;  %v1208_v23 = vunpack.c.l.b16 %v3015_v11  ;;  %v712_v24 = vmul.f32 %v2975_v54, %v3017_v12  ;;  %v713_v25 = vmul.f32 %v2977_v55, %v3019_v13 }
  0x51   : > { %v1080_v26 = vpack.c.b16 %v1048_v18, %v1044_v17  ;;  %v3037_v27 = vpack.c.bf16 %v709_v20, %v708_v19  ;;  %v2484_v28 = vor.u32 %v2628_v15, %v2483_v14  ;;  %v3039_v29 = vunpack.c.l.bf16 %v388_v16 }
  0x52   : > { %v1240_v30 = vpack.c.b16 %v1208_v23, %v1204_v22  ;;  %v3041_v31 = vpack.c.bf16 %v713_v25, %v712_v24  ;;  %v3043_v32 = vunpack.c.h.bf16 %v388_v16  ;;  %v3045_v33 = vunpack.c.l.bf16 %v390_v21 }
  0x53   : > { %4707 = vst [vmem:[#allocation7_spill] sm:$0xff] %v3037_v27  ;;  %1623 = vmatpush.bf16.msra.mxu1 %v1080_v26  ;;  %v1364_v34 = vunpack.c.l.b16 %v3037_v27  ;;  %v3049_v36 = vunpack.c.h.bf16 %v390_v21  ;;  %v508_v37 = vmul.f32 %v2971_v52, %v3039_v29  ;;  %1607 = vmatpush.bf16.msra.mxu0 %v2484_v28  ;;  %v604_v43 = vmul.f32 %v3039_v29, %v2961_v46 }
  0x54   : > { %4708 = vst [vmem:[#allocation8_spill] sm:$0xff] %v3041_v31  ;;  %1642 = vmatpush.bf16.msra.mxu2 %v1240_v30  ;;  %v1368_v38 = vunpack.c.l.b16 %v3041_v31  ;;  %v509_v40 = vmul.f32 %v2973_v53, %v3043_v32  ;;  %v512_v41 = vmul.f32 %v2975_v54, %v3045_v33  ;;  %v605_v44 = vmul.f32 %v3043_v32, %v2963_v47 }
  0x55   : > { %v513_v42 = vmul.f32 %v2977_v55, %v3049_v36  ;;  %v608_v45 = vmul.f32 %v3045_v33, %v2965_v48  ;;  %v609_v62 = vmul.f32 %v3049_v36, %v2967_v49  ;;  %v700_v63 = vmul.f32 %v3039_v29, %v2979_v56 }
  0x56   : > { %v1400_v60 = vpack.c.b16 %v1368_v38, %v1364_v34  ;;  %v3069_v61 = vpack.c.bf16 %v509_v40, %v508_v37  ;;  %v3078_v2 = vpack.c.bf16 %v605_v44, %v604_v43  ;;  %v701_v3 = vmul.f32 %v3043_v32, %v2981_v57 }
  0x57   : > { %v3076_v1 = vpack.c.bf16 %v513_v42, %v512_v41  ;;  %v704_v4 = vmul.f32 %v3045_v33, %v2983_v58  ;;  %v3086_v15 = vpack.c.bf16 %v609_v62, %v608_v45  ;;  %v705_v16 = vmul.f32 %v3049_v36, %v2985_v59 }
  0x58   : > { %1661 = vmatpush.bf16.msra.mxu3 %v1400_v60  ;;  %v1036_v14 = vunpack.c.l.b16 %v3069_v61  ;;  %v2468_v17 = vor.u32 %v2624_v51, %v2467_v50  ;;  %v1196_v19 = vunpack.c.l.b16 %v3078_v2  ;;  %v3092_v20 = vpack.c.bf16 %v701_v3, %v700_v63  ;;  %v2451_v50 = vld [vmem:[%s2949_s23 + $0x40] sm:$0xf]  ;;  %v2620_v51 = vld [vmem:[%s2949_s23 + $0x4c] sm:$0xf0] }
  0x59   : > { %v1040_v18 = vunpack.c.l.b16 %v3076_v1  ;;  %v3094_v21 = vunpack.c.l.bf16 %v384_v0  ;;  %v1200_v22 = vunpack.c.l.b16 %v3086_v15  ;;  %v3097_v23 = vpack.c.bf16 %v705_v16, %v704_v4  ;;  %v380_v3 = vld [vmem:[%s2949_s23 + $0x80] sm:$0xff] }
  0x5a   : > { %4709 = vst [vmem:[#allocation9_spill] sm:$0xff] %v3092_v20  ;;  %1608 = vmatpush.bf16.msra.mxu0 %v2468_v17  ;;  %v3099_v24 = vunpack.c.h.bf16 %v384_v0  ;;  %v3101_v25 = vunpack.c.l.bf16 %v386_v5  ;;  %v1356_v28 = vunpack.c.l.b16 %v3092_v20  ;;  %v3104_v30 = vunpack.c.h.bf16 %v386_v5  ;;  %v382_v17 = vld [vmem:[%s2949_s23 + $0x90] sm:$0xff] }
  0x5b   : > { %4710 = vst [vmem:[#allocation10_spill] sm:$0xff] %v3097_v23  ;;  %v1076_v26 = vpack.c.b16 %v1040_v18, %v1036_v14  ;;  %v500_v34 = vmul.f32 %v3039_v29, %v3094_v21  ;;  %v1236_v37 = vpack.c.b16 %v1200_v22, %v1196_v19  ;;  %v1360_v38 = vunpack.c.l.b16 %v3097_v23 }
  0x5c   : > { %v501_v40 = vmul.f32 %v3043_v32, %v3099_v24  ;;  %v504_v41 = vmul.f32 %v3045_v33, %v3101_v25  ;;  %v505_v42 = vmul.f32 %v3049_v36, %v3104_v30  ;;  %v596_v43 = vmul.f32 %v2971_v52, %v3094_v21 }
  0x5d   : > { %1624 = vmatpush.bf16.msra.mxu1 %v1076_v26  ;;  %v597_v44 = vmul.f32 %v2973_v53, %v3099_v24  ;;  %v600_v45 = vmul.f32 %v2975_v54, %v3101_v25  ;;  %1643 = vmatpush.bf16.msra.mxu2 %v1236_v37  ;;  %v1396_v60 = vpack.c.b16 %v1360_v38, %v1356_v28  ;;  %v3148_v38 = vunpack.c.l.bf16 %v380_v3 }
  0x5e   : > { %v3123_v62 = vpack.c.bf16 %v501_v40, %v500_v34  ;;  %v601_v63 = vmul.f32 %v2977_v55, %v3104_v30  ;;  %v692_v0 = vmul.f32 %v3094_v21, %v2961_v46  ;;  %v3130_v4 = vpack.c.bf16 %v505_v42, %v504_v41 }
  0x5f   : > { %v3132_v5 = vpack.c.bf16 %v597_v44, %v596_v43  ;;  %v693_v14 = vmul.f32 %v3099_v24, %v2963_v47  ;;  %v696_v16 = vmul.f32 %v3101_v25, %v2965_v48  ;;  %1662 = vmatpush.bf16.msra.mxu3 %v1396_v60  ;;  %v697_v22 = vmul.f32 %v3104_v30, %v2967_v49 }
  0x60   : > { %v1028_v18 = vunpack.c.l.b16 %v3123_v62  ;;  %v3140_v19 = vpack.c.bf16 %v601_v63, %v600_v45  ;;  %v2452_v26 = vor.u32 %v2620_v51, %v2451_v50  ;;  %v1032_v28 = vunpack.c.l.b16 %v3130_v4 }
  0x61   : > { %v1188_v34 = vunpack.c.l.b16 %v3132_v5  ;;  %v3146_v37 = vpack.c.bf16 %v693_v14, %v692_v0  ;;  %v3151_v41 = vpack.c.bf16 %v697_v22, %v696_v16  ;;  %v3153_v42 = vunpack.c.h.bf16 %v380_v3  ;;  %v2435_v22 = vld [vmem:[%s2949_s23 + $0x20] sm:$0xf] }
  0x62   : > { %v1192_v40 = vunpack.c.l.b16 %v3140_v19  ;;  %1609 = vmatpush.bf16.msra.mxu0 %v2452_v26  ;;  %v3155_v43 = vunpack.c.l.bf16 %v382_v17  ;;  %v1072_v44 = vpack.c.b16 %v1032_v28, %v1028_v18  ;;  %v3158_v50 = vunpack.c.h.bf16 %v382_v17  ;;  %v2616_v26 = vld [vmem:[%s2949_s23 + $0x2c] sm:$0xf0] }
  0x63   : > { %4711 = vst [vmem:[#allocation11_spill] sm:$0xff] %v3146_v37  ;;  %v1348_v45 = vunpack.c.l.b16 %v3146_v37  ;;  %v492_v51 = vmul.f32 %v3094_v21, %v3148_v38  ;;  %v1352_v63 = vunpack.c.l.b16 %v3151_v41  ;;  %v493_v0 = vmul.f32 %v3099_v24, %v3153_v42 }
  0x64   : > { %4712 = vst [vmem:[#allocation12_spill] sm:$0xff] %v3151_v41  ;;  %v1232_v60 = vpack.c.b16 %v1192_v40, %v1188_v34  ;;  %v496_v3 = vmul.f32 %v3101_v25, %v3155_v43  ;;  %1625 = vmatpush.bf16.msra.mxu1 %v1072_v44  ;;  %v497_v14 = vmul.f32 %v3104_v30, %v3158_v50 }
  0x65   : > { %v588_v16 = vmul.f32 %v3039_v29, %v3148_v38  ;;  %v589_v17 = vmul.f32 %v3043_v32, %v3153_v42  ;;  %v592_v18 = vmul.f32 %v3045_v33, %v3155_v43  ;;  %v1392_v28 = vpack.c.b16 %v1352_v63, %v1348_v45  ;;  %v378_v45 = vld [vmem:[%s2949_s23 + $0x70] sm:$0xff] }
  0x66   : > { %1644 = vmatpush.bf16.msra.mxu2 %v1232_v60  ;;  %v3177_v34 = vpack.c.bf16 %v493_v0, %v492_v51  ;;  %v593_v40 = vmul.f32 %v3049_v36, %v3158_v50  ;;  %v684_v44 = vmul.f32 %v2971_v52, %v3148_v38  ;;  %v3184_v35 = vpack.c.bf16 %v497_v14, %v496_v3 }
  0x67   : > { %v3186_v41 = vpack.c.bf16 %v589_v17, %v588_v16  ;;  %v685_v37 = vmul.f32 %v2973_v53, %v3153_v42  ;;  %v688_v60 = vmul.f32 %v2975_v54, %v3155_v43  ;;  %1663 = vmatpush.bf16.msra.mxu3 %v1392_v28  ;;  %v689_v0 = vmul.f32 %v2977_v55, %v3158_v50 }
  0x68   : > { %4713 = vst [vmem:[#allocation13_spill] sm:$0xff] %v3177_v34  ;;  %v1020_v51 = vunpack.c.l.b16 %v3177_v34  ;;  %v3194_v63 = vpack.c.bf16 %v593_v40, %v592_v18  ;;  %v2436_v23 = vor.u32 %v2616_v26, %v2435_v22  ;;  %v1024_v3 = vunpack.c.l.b16 %v3184_v35 }
  0x69   : > { %4714 = vst [vmem:[#allocation14_spill] sm:$0xff] %v3184_v35  ;;  %v1180_v14 = vunpack.c.l.b16 %v3186_v41  ;;  %v3200_v16 = vpack.c.bf16 %v685_v37, %v684_v44  ;;  %v3202_v17 = vunpack.c.l.bf16 %v376_v39  ;;  %v3205_v31 = vpack.c.bf16 %v689_v0, %v688_v60  ;;  %v2419_v0 = vld [vmem:[%s2949_s23] sm:$0xf] }
  0x6a   : > { %4715 = vst [vmem:[#allocation15_spill] sm:$0xff] %v3186_v41  ;;  %v1184_v20 = vunpack.c.l.b16 %v3194_v63  ;;  %1610 = vmatpush.bf16.msra.mxu0 %v2436_v23  ;;  %v3207_v18 = vunpack.c.h.bf16 %v376_v39  ;;  %v3209_v28 = vunpack.c.l.bf16 %v378_v45  ;;  %v1068_v22 = vpack.c.b16 %v1024_v3, %v1020_v51  ;;  %v2612_v3 = vld [vmem:[%s2949_s23 + $0xc] sm:$0xf0] }
  0x6b   : > { %4716 = vst [vmem:[#allocation16_spill] sm:$0xff] %v3194_v63  ;;  %v1340_v26 = vunpack.c.l.b16 %v3200_v16  ;;  %v3212_v40 = vunpack.c.h.bf16 %v378_v45  ;;  %v484_v37 = vmul.f32 %v3148_v38, %v3202_v17  ;;  %v1344_v27 = vunpack.c.l.b16 %v3205_v31 }
  0x6c   : > { %4717 = vst [vmem:[#allocation17_spill] sm:$0xff] %v3200_v16  ;;  %v1228_v44 = vpack.c.b16 %v1184_v20, %v1180_v14  ;;  %v485_v23 = vmul.f32 %v3153_v42, %v3207_v18  ;;  %v488_v39 = vmul.f32 %v3155_v43, %v3209_v28  ;;  %1626 = vmatpush.bf16.msra.mxu1 %v1068_v22 }
  0x6d   : > { %4718 = vst [vmem:[#allocation18_spill] sm:$0xff] %v3205_v31  ;;  %v489_v60 = vmul.f32 %v3158_v50, %v3212_v40  ;;  %v580_v45 = vmul.f32 %v3094_v21, %v3202_v17  ;;  %v581_v51 = vmul.f32 %v3099_v24, %v3207_v18  ;;  %v584_v20 = vmul.f32 %v3101_v25, %v3209_v28 }
  0x6e   : > { %1645 = vmatpush.bf16.msra.mxu2 %v1228_v44  ;;  %v1388_v14 = vpack.c.b16 %v1344_v27, %v1340_v26  ;;  %v3231_v31 = vpack.c.bf16 %v485_v23, %v484_v37  ;;  %v585_v22 = vmul.f32 %v3104_v30, %v3212_v40  ;;  %v676_v16 = vmul.f32 %v3039_v29, %v3202_v17 }
  0x6f   : > { %v3237_v63 = vpack.c.bf16 %v489_v60, %v488_v39  ;;  %v3239_v41 = vpack.c.bf16 %v581_v51, %v580_v45  ;;  %v677_v35 = vmul.f32 %v3043_v32, %v3207_v18  ;;  %v680_v34 = vmul.f32 %v3045_v33, %v3209_v28 }
  0x70   : > { %4719 = vst [vmem:[#allocation19_spill] sm:$0xff] %v3231_v31  ;;  %1664 = vmatpush.bf16.msra.mxu3 %v1388_v14  ;;  %v1012_v27 = vunpack.c.l.b16 %v3231_v31  ;;  %v3246_v26 = vpack.c.bf16 %v585_v22, %v584_v20  ;;  %v681_v37 = vmul.f32 %v3049_v36, %v3212_v40  ;;  %v2420_v44 = vor.u32 %v2612_v3, %v2419_v0 }
  0x71   : > { %4720 = vst [vmem:[#allocation20_spill] sm:$0xff] %v3237_v63  ;;  %v1016_v23 = vunpack.c.l.b16 %v3237_v63  ;;  %v1172_v39 = vunpack.c.l.b16 %v3239_v41  ;;  %v3252_v60 = vpack.c.bf16 %v677_v35, %v676_v16  ;;  %v476_v45 = vmul.f32 %v3202_v17, %v3009_v8 }
  0x72   : > { %4721 = vst [vmem:[#allocation21_spill] sm:$0xff] %v3239_v41  ;;  %v1176_v51 = vunpack.c.l.b16 %v3246_v26  ;;  %v3257_v14 = vpack.c.bf16 %v681_v37, %v680_v34  ;;  %1611 = vmatpush.bf16.msra.mxu0 %v2420_v44  ;;  %v477_v20 = vmul.f32 %v3207_v18, %v3011_v9  ;;  %v480_v0 = vmul.f32 %v3209_v28, %v3017_v12 }
  0x73   : > { %4722 = vst [vmem:[#allocation22_spill] sm:$0xff] %v3246_v26  ;;  %v1064_v3 = vpack.c.b16 %v1016_v23, %v1012_v27  ;;  %v1332_v22 = vunpack.c.l.b16 %v3252_v60  ;;  %v481_v35 = vmul.f32 %v3212_v40, %v3019_v13  ;;  %v572_v16 = vmul.f32 %v3148_v38, %v3009_v8 }
  0x74   : > { %4723 = vst [vmem:[#allocation23_spill] sm:$0xff] %v3252_v60  ;;  %v1224_v41 = vpack.c.b16 %v1176_v51, %v1172_v39  ;;  %v1336_v34 = vunpack.c.l.b16 %v3257_v14  ;;  %v3269_v37 = vpack.c.bf16 %v477_v20, %v476_v45  ;;  %v573_v44 = vmul.f32 %v3153_v42, %v3011_v9  ;;  %v2547_v39 = vld [vmem:[%s4619_s1] sm:$0xf]  ;;  %v2644_v45 = vld [vmem:[%s4619_s1 + $0x10] sm:$0xf0] }
  0x75   : > { %4724 = vst [vmem:[#allocation24_spill] sm:$0xff] %v3257_v14  ;;  %1627 = vmatpush.bf16.msra.mxu1 %v1064_v3  ;;  %v3273_v26 = vpack.c.bf16 %v481_v35, %v480_v0  ;;  %v576_v27 = vmul.f32 %v3155_v43, %v3017_v12  ;;  %v577_v23 = vmul.f32 %v3158_v50, %v3019_v13 }
  0x76   : > { %4725 = vst [vmem:[#allocation25_spill] sm:$0xff] %v3269_v37  ;;  %v668_v60 = vmul.f32 %v3094_v21, %v3009_v8  ;;  %1646 = vmatpush.bf16.msra.mxu2 %v1224_v41  ;;  %v1384_v51 = vpack.c.b16 %v1336_v34, %v1332_v22  ;;  %v1004_v20 = vunpack.c.l.b16 %v3269_v37  ;;  %v3288_v0 = vpack.c.bf16 %v573_v44, %v572_v16 }
  0x77   : > { %4726 = vst [vmem:[#allocation26_spill] sm:$0xff] %v3273_v26  ;;  %v669_v3 = vmul.f32 %v3099_v24, %v3011_v9  ;;  %v1008_v35 = vunpack.c.l.b16 %v3273_v26  ;;  %v3293_v14 = vpack.c.bf16 %v577_v23, %v576_v27  ;;  %v672_v63 = vmul.f32 %v3101_v25, %v3017_v12 }
  0x78   : > { %v673_v31 = vmul.f32 %v3104_v30, %v3019_v13  ;;  %1665 = vmatpush.bf16.msra.mxu3 %v1384_v51  ;;  %v1164_v41 = vunpack.c.l.b16 %v3288_v0  ;;  %v3302_v16 = vor.u32 %v2644_v45, %v2547_v39  ;;  %v468_v34 = vmul.f32 %v3009_v8, %v2979_v56 }
  0x79   : > { %v3300_v22 = vpack.c.bf16 %v669_v3, %v668_v60  ;;  %v1060_v44 = vpack.c.b16 %v1008_v35, %v1004_v20  ;;  %v1168_v27 = vunpack.c.l.b16 %v3293_v14  ;;  %v469_v26 = vmul.f32 %v3011_v9, %v2981_v57 }
  0x7a   : > { %4728 = vst [vmem:[#allocation28_spill] sm:$0xff] %v3302_v16  ;;  %v3307_v23 = vpack.c.bf16 %v673_v31, %v672_v63  ;;  %1612 = vmatmul.bf16.vlgmr.msra.gmra.mxu0 %v3302_v16  ;;  %v472_v60 = vmul.f32 %v3017_v12, %v2983_v58  ;;  %v473_v39 = vmul.f32 %v3019_v13, %v2985_v59 }
  0x7b   : > { %4727 = vst [vmem:[#allocation27_spill] sm:$0xff] %v3300_v22  ;;  %v1324_v37 = vunpack.c.l.b16 %v3300_v22  ;;  %v564_v45 = vmul.f32 %v3202_v17, %v2979_v56  ;;  %1628 = vmatpush.bf16.msra.mxu1 %v1060_v44  ;;  %v1220_v51 = vpack.c.b16 %v1168_v27, %v1164_v41  ;;  %v3320_v63 = vpack.c.bf16 %v469_v26, %v468_v34 }
  0x7c   : > { %4729 = vst [vmem:[#allocation29_spill] sm:$0xff] %v3307_v23  ;;  %v1328_v31 = vunpack.c.l.b16 %v3307_v23  ;;  %v565_v20 = vmul.f32 %v3207_v18, %v2981_v57  ;;  %v3324_v3 = vpack.c.bf16 %v473_v39, %v472_v60  ;;  %v568_v35 = vmul.f32 %v3209_v28, %v2983_v58 }
  0x7d   : > { %v569_v22 = vmul.f32 %v3212_v40, %v2985_v59  ;;  %v660_v16 = vmul.f32 %v3148_v38, %v2979_v56  ;;  %1647 = vmatpush.bf16.msra.mxu2 %v1220_v51  ;;  %v996_v44 = vunpack.c.l.b16 %v3320_v63  ;;  %v661_v34 = vmul.f32 %v3153_v42, %v2981_v57 }
  0x7e   : > { %4730 = vst [vmem:[#allocation30_spill] sm:$0xff] %v3324_v3  ;;  %v1380_v41 = vpack.c.b16 %v1328_v31, %v1324_v37  ;;  %v3333_v26 = vpack.c.bf16 %v565_v20, %v564_v45  ;;  %v1000_v27 = vunpack.c.l.b16 %v3324_v3  ;;  %v664_v39 = vmul.f32 %v3155_v43, %v2983_v58 }
  0x7f   : > { %v3338_v60 = vpack.c.bf16 %v569_v22, %v568_v35  ;;  %v665_v23 = vmul.f32 %v3158_v50, %v2985_v59  ;;  %v3345_v51 = vpack.c.bf16 %v661_v34, %v660_v16  ;;  %v772_v45 = vmul.f32 %v2971_v52, %v3202_v17 }
  0x80   : > { %1666 = vmatpush.bf16.msra.mxu3 %v1380_v41  ;;  %v1156_v37 = vunpack.c.l.b16 %v3333_v26  ;;  %v773_v31 = vmul.f32 %v2973_v53, %v3207_v18  ;;  %v1056_v20 = vpack.c.b16 %v1000_v27, %v996_v44  ;;  %v776_v3 = vmul.f32 %v2975_v54, %v3209_v28 }
  0x81   : > { %4731 = vst [vmem:[#allocation31_spill] sm:$0xff] %v3345_v51  ;;  %v1160_v22 = vunpack.c.l.b16 %v3338_v60  ;;  %v3352_v35 = vpack.c.bf16 %v665_v23, %v664_v39  ;;  %v1316_v41 = vunpack.c.l.b16 %v3345_v51  ;;  %v777_v16 = vmul.f32 %v2977_v55, %v3212_v40  ;;  %v2643_v51 = vld [vmem:[%s4619_s1 + $0xc] sm:$0xf] }
  0x82   : > { %v3359_v34 = vpack.c.bf16 %v773_v31, %v772_v45  ;;  %v460_v52 = vmul.f32 %v2979_v56, %v2961_v46  ;;  %1629 = vmatpush.bf16.msra.mxu1 %v1056_v20  ;;  %v461_v23 = vmul.f32 %v2981_v57, %v2963_v47  ;;  %v464_v54 = vmul.f32 %v2983_v58, %v2965_v48 }
  0x83   : > { %4732 = vst [vmem:[#allocation32_spill] sm:$0xff] %v3352_v35  ;;  %v1216_v53 = vpack.c.b16 %v1160_v22, %v1156_v37  ;;  %v1320_v44 = vunpack.c.l.b16 %v3352_v35  ;;  %v3368_v27 = vpack.c.bf16 %v777_v16, %v776_v3  ;;  %v465_v45 = vmul.f32 %v2985_v59, %v2967_v49 }
  0x84   : > { %4733 = vst [vmem:[#allocation33_spill] sm:$0xff] %v3359_v34  ;;  %v1476_v39 = vunpack.c.l.b16 %v3359_v34  ;;  %v3374_v37 = vpack.c.bf16 %v461_v23, %v460_v52  ;;  %v556_v20 = vmul.f32 %v3009_v8, %v2961_v46  ;;  %v557_v22 = vmul.f32 %v3011_v9, %v2963_v47 }
  0x85   : > { %4734 = vst [vmem:[#allocation34_spill] sm:$0xff] %v3368_v27  ;;  %1648 = vmatpush.bf16.msra.mxu2 %v1216_v53  ;;  %v1376_v31 = vpack.c.b16 %v1320_v44, %v1316_v41  ;;  %v1480_v3 = vunpack.c.l.b16 %v3368_v27  ;;  %v3382_v35 = vpack.c.bf16 %v465_v45, %v464_v54  ;;  %v560_v55 = vmul.f32 %v3017_v12, %v2965_v48 }
  0x86   : > { %v988_v41 = vunpack.c.l.b16 %v3374_v37  ;;  %v561_v52 = vmul.f32 %v3019_v13, %v2967_v49  ;;  %v3389_v53 = vpack.c.bf16 %v557_v22, %v556_v20  ;;  %v652_v44 = vmul.f32 %v3202_v17, %v2961_v46  ;;  %v2549_v20 = vld [vmem:[%s4619_s1 + $0x14] sm:$0xf0]  ;;  %v2555_v17 = vld [vmem:[%s4619_s1 + $0x8] sm:$0xf] }
  0x87   : > { %4735 = vst [vmem:[#allocation35_spill] sm:$0xff] %v3382_v35  ;;  %1667 = vmatpush.bf16.msra.mxu3 %v1376_v31  ;;  %v3393_v23 = vpack.c.b16 %v1480_v3, %v1476_v39  ;;  %v992_v16 = vunpack.c.l.b16 %v3382_v35  ;;  %v653_v54 = vmul.f32 %v3207_v18, %v2963_v47  ;;  %v656_v45 = vmul.f32 %v3209_v28, %v2965_v48  ;;  %v2642_v31 = vld [vmem:[%s4619_s1 + $0x4] sm:$0xf]  ;;  %v2645_v3 = vld [vmem:[%s4619_s1 + $0x18] sm:$0xf0] }
  0x88   : > { %4736 = vst [vmem:[#allocation36_spill] sm:$0xff] %v3389_v53  ;;  %v3409_v39 = vpack.c.bf16 %v561_v52, %v560_v55  ;;  %v1148_v22 = vunpack.c.l.b16 %v3389_v53  ;;  %v657_v18 = vmul.f32 %v3212_v40, %v2967_v49  ;;  %v764_v28 = vmul.f32 %v3039_v29, %v3009_v8  ;;  %v2557_v55 = vld [vmem:[%s4619_s1 + $0x1c] sm:$0xf0] }
  0x89   : > { %1680 = vmatpush.bf16.msrb.mxu0 %v3393_v23  ;;  %v1052_v40 = vpack.c.b16 %v992_v16, %v988_v41  ;;  %v3426_v52 = vpack.c.bf16 %v653_v54, %v652_v44  ;;  %v765_v8 = vmul.f32 %v3043_v32, %v3011_v9  ;;  %v768_v29 = vmul.f32 %v3045_v33, %v3017_v12  ;;  %v2638_v32 = vld [vmem:[%s2949_s23 + $0xe4] sm:$0xf]  ;;  %v2533_v12 = vld [vmem:[%s2949_s23 + $0xf0] sm:$0xf0] }
  0x8a   : > { %v1152_v27 = vunpack.c.l.b16 %v3409_v39  ;;  %v3433_v34 = vpack.c.bf16 %v657_v18, %v656_v45  ;;  %v769_v53 = vmul.f32 %v3049_v36, %v3019_v13  ;;  %v3437_v35 = vor.u32 %v2642_v31, %v2549_v20  ;;  %v2517_v18 = vld [vmem:[%s2949_s23 + $0xd0] sm:$0xf0] }
  0x8b   : > { %1630 = vmatpush.bf16.msra.mxu1 %v1052_v40  ;;  %v1308_v16 = vunpack.c.l.b16 %v3426_v52  ;;  %v3440_v41 = vpack.c.bf16 %v765_v8, %v764_v28  ;;  %v3442_v44 = vor.u32 %v2645_v3, %v2555_v17  ;;  %v3444_v9 = vor.u32 %v2643_v51, %v2557_v55 }
  0x8c   : > { %4737 = vst [vmem:[#allocation37_spill] sm:$0xff] %v3437_v35  ;;  %v1212_v33 = vpack.c.b16 %v1152_v27, %v1148_v22  ;;  %v1312_v54 = vunpack.c.l.b16 %v3433_v34  ;;  %v3449_v45 = vpack.c.bf16 %v769_v53, %v768_v29  ;;  %v756_v13 = vmul.f32 %v3094_v21, %v2979_v56  ;;  %v2634_v22 = vld [vmem:[%s2949_s23 + $0xc4] sm:$0xf]  ;;  %v2501_v29 = vld [vmem:[%s2949_s23 + $0xb0] sm:$0xf0] }
  0x8d   : > { %4738 = vst [vmem:[#allocation38_spill] sm:$0xff] %v3442_v44  ;;  %v1468_v36 = vunpack.c.l.b16 %v3440_v41  ;;  %v757_v31 = vmul.f32 %v3099_v24, %v2981_v57  ;;  %v760_v20 = vmul.f32 %v3101_v25, %v2983_v58  ;;  %v761_v51 = vmul.f32 %v3104_v30, %v2985_v59  ;;  %v1528_v59 = vld [vmem:[%s4620_s2] sm:$0xff] }
  0x8e   : > { %4739 = vst [vmem:[#allocation39_spill] sm:$0xff] %v3444_v9  ;;  %1649 = vmatpush.bf16.msra.mxu2 %v1212_v33  ;;  %v1372_v27 = vpack.c.b16 %v1312_v54, %v1308_v16  ;;  %v1472_v53 = vunpack.c.l.b16 %v3449_v45  ;;  %1631 = vmatmul.bf16.vlgmr.msra.gmra.mxu1 %v3437_v35  ;;  %v2536_v56 = vor.u32 %v2638_v32, %v2533_v12  ;;  %v1045_v21 = vunpack.c.h.b16 %v3005_v6  ;;  %v1530_v16 = vld [vmem:[%s4620_s2 + $0x10] sm:$0xff]  ;;  %v3514_v54 = vld [vmem:[%s2949_s23 + $0x84] sm:$0xf] }
  0x8f   : > { %v3463_v17 = vpack.c.bf16 %v757_v31, %v756_v13  ;;  %v3465_v57 = vpack.c.bf16 %v761_v51, %v760_v20  ;;  %v1049_v58 = vunpack.c.h.b16 %v3007_v7  ;;  %v1205_v24 = vunpack.c.h.b16 %v3013_v10  ;;  %v3517_v13 = vld [vmem:[%s2949_s23 + $0x90] sm:$0xf0]  ;;  %v2569_v51 = vld [vmem:[%s4619_s1 + $0x3c] sm:$0xf0] }
  0x90   : > { %1668 = vmatpush.bf16.msra.mxu3 %v1372_v27  ;;  %v3472_v25 = vpack.c.b16 %v1472_v53, %v1468_v36  ;;  %1699 = vmatpush.bf16.msrb.mxu1 %v2536_v56  ;;  %v1209_v30 = vunpack.c.h.b16 %v3015_v11  ;;  %v748_v6 = vmul.f32 %v3148_v38, %v2961_v46  ;;  %v2777_v3 = vmov 0   ;;  %v2567_v46 = vld [vmem:[%s4619_s1 + $0x28] sm:$0xf]  ;;  %v2649_v11 = vld [vmem:[%s4619_s1 + $0x38] sm:$0xf0] }
  0x91   : > { %1650 = vmatmul.bf16.vlgmr.msra.gmra.mxu2 %v3442_v44  ;;  %v1460_v7 = vunpack.c.l.b16 %v3463_v17  ;;  %v1464_v10 = vunpack.c.l.b16 %v3465_v57  ;;  %v1081_v28 = vpack.c.b16 %v1049_v58, %v1045_v21  ;;  %2695 = vset.pattern.permute.xlu1 %v2777_v3  ;;  %v749_v55 = vmul.f32 %v3153_v42, %v2963_v47  ;;  %v2630_v42 = vld [vmem:[%s2949_s23 + $0xa4] sm:$0xf]  ;;  %v2575_v21 = vld [vmem:[%s4619_s1 + $0x30] sm:$0xf] }
  0x92   : > { %1681 = vmatpush.bf16.msrb.mxu0 %v3472_v25  ;;  %v1241_v38 = vpack.c.b16 %v1209_v30, %v1205_v24  ;;  %1534 = vperm.xlu1 %2695, %v1528_v59   ;;  %v752_v40 = vmul.f32 %v3155_v43, %v2965_v48  ;;  %v753_v8 = vmul.f32 %v3158_v50, %v2967_v49  ;;  %v1037_v47 = vunpack.c.h.b16 %v3069_v61  ;;  %v2650_v58 = vld [vmem:[%s4619_s1 + $0x40] sm:$0xf0]  ;;  %v2648_v24 = vld [vmem:[%s4619_s1 + $0x34] sm:$0xf]  ;;  %v4741_v59 = vld [vmem:[#allocation13_spill] sm:$0xff] }
  0x93   : > { %1669 = vmatmul.bf16.vlgmr.msra.gmra.mxu3 %v3444_v9  ;;  %v3502_v32 = vpack.c.b16 %v1464_v10, %v1460_v7  ;;  %1718 = vmatpush.bf16.msrb.mxu2 %v1081_v28  ;;  %v3504_v12 = vpack.c.bf16 %v749_v55, %v748_v6  ;;  %v2520_v48 = vor.u32 %v2634_v22, %v2517_v18  ;;  %v1041_v49 = vunpack.c.h.b16 %v3076_v1  ;;  %v4742_v6 = vld [vmem:[#allocation14_spill] sm:$0xff]  ;;  %v2469_v10 = vld [vmem:[%s2949_s23 + $0x70] sm:$0xf0]  ;;  %v4743_v55 = vld [vmem:[#allocation15_spill] sm:$0xff] }
  0x94   : > { %1737 = vmatpush.bf16.msrb.mxu3 %v1241_v38  ;;  %v3507_v43 = vpack.c.bf16 %v753_v8, %v752_v40  ;;  %v1197_v61 = vunpack.c.h.b16 %v3078_v2  ;;  %v1201_v50 = vunpack.c.h.b16 %v3086_v15  ;;  %v3511_v33 = vor.u32 %v2649_v11, %v2567_v46  ;;  %2694 = vset.pattern.permute.xlu0 %v2777_v3  ;;  %v1529_v2 = vld [vmem:[%s4620_s2 + $0x8] sm:$0xff]  ;;  %v4744_v46 = vld [vmem:[#allocation16_spill] sm:$0xff] }
  0x95   : > { %v1452_v36 = vunpack.c.l.b16 %v3504_v12  ;;  %1700 = vmatpush.bf16.msrb.mxu1 %v2520_v48  ;;  %v1077_v31 = vpack.c.b16 %v1041_v49, %v1037_v47  ;;  %v2504_v20 = vor.u32 %v2630_v42, %v2501_v29  ;;  %v1029_v1 = vunpack.c.h.b16 %v3123_v62  ;;  %v2647_v15 = vld [vmem:[%s4619_s1 + $0x2c] sm:$0xf]  ;;  %1544 = vperm.xlu0 %2694, %v1530_v16   ;;  %v2577_v18 = vld [vmem:[%s4619_s1 + $0x44] sm:$0xf0]  ;;  %v3564_v40 = vld [vmem:[%s2949_s23 + $0x50] sm:$0xf0] }
  0x96   : > { %4740 = vst [vmem:[#allocation40_spill] sm:$0xff] %v3511_v33  ;;  %1682 = vmatpush.bf16.msrb.mxu0 %v3502_v32  ;;  %v1456_v27 = vunpack.c.l.b16 %v3507_v43  ;;  %v1237_v62 = vpack.c.b16 %v1201_v50, %v1197_v61  ;;  %v1033_v53 = vunpack.c.h.b16 %v3130_v4  ;;  %v1189_v56 = vunpack.c.h.b16 %v3132_v5  ;;  %2696 = vset.pattern.permute.xlu2 %v2777_v3  ;;  %v3553_v7 = vld [vmem:[%s2949_s23 + $0x64] sm:$0xf]  ;;  %v2563_v16 = vld [vmem:[%s4619_s1 + $0x10] sm:$0xf] }
  0x97   : > { %1719 = vmatpush.bf16.msrb.mxu2 %v1077_v31  ;;  %1617 = vmatmul.bf16.gmra.mxu0 %v3511_v33  ;;  %v1193_v4 = vunpack.c.h.b16 %v3140_v19  ;;  %v2488_v5 = vor.u32 %v3514_v54, %v3517_v13  ;;  %v1021_v30 = vunpack.c.h.b16 %v4741_v59  ;;  %v1025_v22 = vunpack.c.h.b16 %v4742_v6  ;;  %v3561_v38 = vld [vmem:[%s2949_s23 + $0x44] sm:$0xf]  ;;  %v4748_v50 = vld [vmem:[#allocation19_spill] sm:$0xff]  ;;  %v3585_v31 = vld [vmem:[%s2949_s23 + $0x30] sm:$0xf0] }
  0x98   : > { %v3556_v28 = vpack.c.b16 %v1456_v27, %v1452_v36  ;;  %1738 = vmatpush.bf16.msrb.mxu3 %v1237_v62  ;;  %v1073_v3 = vpack.c.b16 %v1033_v53, %v1029_v1  ;;  %v1181_v19 = vunpack.c.h.b16 %v4743_v55  ;;  %v1185_v11 = vunpack.c.h.b16 %v4744_v46  ;;  %v2646_v13 = vld [vmem:[%s4619_s1 + $0x20] sm:$0xf0]  ;;  %v4752_v53 = vld [vmem:[#allocation25_spill] sm:$0xff]  ;;  %v3603_v6 = vld [vmem:[%s2949_s23 + $0x10] sm:$0xf0] }
  0x99   : > { %1701 = vmatpush.bf16.msrb.mxu1 %v2504_v20  ;;  %v1233_v8 = vpack.c.b16 %v1193_v4, %v1189_v56  ;;  %v1069_v47 = vpack.c.b16 %v1025_v22, %v1021_v30  ;;  %v3566_v42 = vor.u32 %v2647_v15, %v2569_v51  ;;  %v3568_v29 = vor.u32 %v2650_v58, %v2575_v21  ;;  %v3582_v36 = vld [vmem:[%s2949_s23 + $0x24] sm:$0xf]  ;;  %v4749_v20 = vld [vmem:[#allocation20_spill] sm:$0xff] }
  0x9a   : > { %1683 = vmatpush.bf16.msrb.mxu0 %v3556_v28  ;;  %1539 = vperm.xlu1 %2695, %v1529_v2   ;;  %v1229_v48 = vpack.c.b16 %v1185_v11, %v1181_v19  ;;  %v3574_v49 = vor.u32 %v2648_v24, %v2577_v18  ;;  %v2472_v61 = vor.u32 %v3553_v7, %v2469_v10  ;;  %v1013_v54 = vunpack.c.h.b16 %v4748_v50  ;;  %v4750_v2 = vld [vmem:[#allocation21_spill] sm:$0xff]  ;;  %v4751_v51 = vld [vmem:[#allocation22_spill] sm:$0xff]  ;;  %v4756_v11 = vld [vmem:[#allocation7_spill] sm:$0xff] }
  0x9b   : > { %4745 = vst [vmem:[#allocation13_spill] sm:$0xff] %v3566_v42  ;;  %1720 = vmatpush.bf16.msrb.mxu2 %v1073_v3  ;;  %v1017_v1 = vunpack.c.h.b16 %v4749_v20  ;;  %v1173_v15 = vunpack.c.h.b16 %v4750_v2  ;;  %v1177_v27 = vunpack.c.h.b16 %v4751_v51  ;;  %v2456_v62 = vor.u32 %v3561_v38, %v3564_v40  ;;  %v4753_v21 = vld [vmem:[#allocation26_spill] sm:$0xff]  ;;  %v1531_v59 = vld [vmem:[%s4620_s2 + $0x18] sm:$0xff]  ;;  %v4760_v50 = vld [vmem:[#allocation35_spill] sm:$0xff] }
  0x9c   : > { %4746 = vst [vmem:[#allocation14_spill] sm:$0xff] %v3568_v29  ;;  %1739 = vmatpush.bf16.msrb.mxu3 %v1233_v8  ;;  %v1005_v56 = vunpack.c.h.b16 %v4752_v53  ;;  %v1009_v58 = vunpack.c.h.b16 %v4753_v21  ;;  %v1165_v24 = vunpack.c.h.b16 %v3288_v0  ;;  %v1169_v4 = vunpack.c.h.b16 %v3293_v14  ;;  %v3600_v30 = vld [vmem:[%s2949_s23 + $0x4] sm:$0xf]  ;;  %v4758_v40 = vld [vmem:[#allocation8_spill] sm:$0xff]  ;;  %v3632_v20 = vld [vmem:[%s2949_s23 + $0xf4] sm:$0xf0] }
  0x9d   : > { %4747 = vst [vmem:[#allocation15_spill] sm:$0xff] %v3574_v49  ;;  %1702 = vmatpush.bf16.msrb.mxu1 %v2488_v5  ;;  %v1065_v22 = vpack.c.b16 %v1017_v1, %v1013_v54  ;;  %v1225_v18 = vpack.c.b16 %v1177_v27, %v1173_v15  ;;  %v3605_v7 = vor.u32 %v2646_v13, %v2563_v16  ;;  %v997_v3 = vunpack.c.h.b16 %v3320_v63  ;;  %v4755_v55 = vld [vmem:[#allocation30_spill] sm:$0xff]  ;;  %v4761_v54 = vld [vmem:[#allocation36_spill] sm:$0xff]  ;;  %v3629_v13 = vld [vmem:[%s2949_s23 + $0xe8] sm:$0xf] }
  0x9e   : > { %v2440_v10 = vor.u32 %v3582_v36, %v3585_v31  ;;  %1684 = vmatpush.bf16.msrb.mxu0 %v3393_v23  ;;  %1636 = vmatmul.bf16.gmra.mxu1 %v3566_v42  ;;  %v1061_v14 = vpack.c.b16 %v1009_v58, %v1005_v56  ;;  %v1221_v0 = vpack.c.b16 %v1169_v4, %v1165_v24  ;;  %v1001_v5 = vunpack.c.h.b16 %v4755_v55  ;;  %v365_v1 = vld [vmem:[%s2949_s23 + $0x8] sm:$0xff]  ;;  %v4762_v15 = vld [vmem:[#allocation9_spill] sm:$0xff]  ;;  %v4763_v51 = vld [vmem:[#allocation10_spill] sm:$0xff] }
  0x9f   : > { %4754 = vst [vmem:[#allocation16_spill] sm:$0xff] %v3605_v7  ;;  %1721 = vmatpush.bf16.msrb.mxu2 %v1069_v47  ;;  %v1157_v19 = vunpack.c.h.b16 %v3333_v26  ;;  %v1161_v46 = vunpack.c.h.b16 %v3338_v60  ;;  %v4757_v38 = vunpack.c.h.b16 %v4756_v11  ;;  %v4759_v23 = vunpack.c.h.b16 %v4758_v40  ;;  %1549 = vperm.xlu0 %2694, %v1531_v59   ;;  %v367_v53 = vld [vmem:[%s2949_s23 + $0x18] sm:$0xff]  ;;  %v4764_v21 = vld [vmem:[#allocation11_spill] sm:$0xff]  ;;  %v4765_v24 = vld [vmem:[#allocation12_spill] sm:$0xff] }
  0xa0   : > { %v2424_v16 = vor.u32 %v3600_v30, %v3603_v6  ;;  %1740 = vmatpush.bf16.msrb.mxu3 %v1229_v48  ;;  %v3623_v63 = vpack.c.b16 %v1001_v5, %v997_v3  ;;  %v989_v47 = vunpack.c.h.b16 %v3374_v37  ;;  %v993_v26 = vunpack.c.h.b16 %v4760_v50  ;;  %v4766_v59 = vld [vmem:[#allocation33_spill] sm:$0xff]  ;;  %v3735_v31 = vld [vmem:[%s2949_s23 + $0xa8] sm:$0xf] }
  0xa1   : > { %v3619_v8 = vpack.c.b16 %v4759_v23, %v4757_v38  ;;  %v1149_v60 = vunpack.c.h.b16 %v4761_v54  ;;  %1655 = vmatmul.bf16.gmra.mxu2 %v3568_v29  ;;  %1703 = vmatpush.bf16.msrb.mxu1 %v2472_v61  ;;  %v3636_v2 = vpack.c.b16 %v1161_v46, %v1157_v19  ;;  %v1153_v48 = vunpack.c.h.b16 %v3409_v39  ;;  %v4768_v61 = vld [vmem:[#allocation34_spill] sm:$0xff]  ;;  %v393_v39 = vld [vmem:[%s2949_s23 + $0xe8] sm:$0xff]  ;;  %v395_v19 = vld [vmem:[%s2949_s23 + $0xf8] sm:$0xff] }
  0xa2   : > { %v1357_v37 = vunpack.c.h.b16 %v4762_v15  ;;  %v1361_v27 = vunpack.c.h.b16 %v4763_v51  ;;  %1685 = vmatpush.bf16.msrb.mxu0 %v3472_v25  ;;  %v3643_v56 = vpack.c.b16 %v993_v26, %v989_v47  ;;  %v1349_v58 = vunpack.c.h.b16 %v4764_v21  ;;  %v4770_v15 = vld [vmem:[#allocation17_spill] sm:$0xff]  ;;  %v4771_v51 = vld [vmem:[#allocation18_spill] sm:$0xff] }
  0xa3   : > { %v1353_v4 = vunpack.c.h.b16 %v4765_v24  ;;  %v4767_v3 = vunpack.c.h.b16 %v4766_v59  ;;  %v4769_v55 = vunpack.c.h.b16 %v4768_v61  ;;  %1674 = vmatmul.bf16.gmra.mxu3 %v3574_v49  ;;  %1722 = vmatpush.bf16.msrb.mxu2 %v1065_v22  ;;  %v3656_v25 = vpack.c.b16 %v1153_v48, %v1149_v60  ;;  %v3681_v48 = vld [vmem:[%s2949_s23 + $0xc8] sm:$0xf]  ;;  %v391_v21 = vld [vmem:[%s2949_s23 + $0xd8] sm:$0xff] }
  0xa4   : > { %v3658_v46 = vpack.c.b16 %v1361_v27, %v1357_v37  ;;  %v2540_v11 = vor.u32 %v3632_v20, %v3629_v13  ;;  %v3662_v38 = vunpack.c.l.bf16 %v365_v1  ;;  %1741 = vmatpush.bf16.msrb.mxu3 %v1225_v18  ;;  %v3666_v23 = vunpack.c.h.bf16 %v365_v1  ;;  %v3684_v18 = vld [vmem:[%s2949_s23 + $0xd4] sm:$0xf0]  ;;  %v389_v1 = vld [vmem:[%s2949_s23 + $0xc8] sm:$0xff] }
  0xa5   : > { %v3651_v5 = vpack.c.b16 %v4769_v55, %v4767_v3  ;;  %v3664_v40 = vpack.c.b16 %v1353_v4, %v1349_v58  ;;  %v3668_v47 = vunpack.c.l.bf16 %v367_v53  ;;  %v3670_v22 = vunpack.c.h.bf16 %v367_v53  ;;  %1704 = vmatpush.bf16.msrb.mxu1 %v2456_v62 }
  0xa6   : > { %v3672_v50 = vunpack.c.l.bf16 %v393_v39  ;;  %v3674_v26 = vunpack.c.h.bf16 %v393_v39  ;;  %v3676_v54 = vunpack.c.l.bf16 %v395_v19  ;;  %v3678_v60 = vunpack.c.h.bf16 %v395_v19  ;;  %1686 = vmatpush.bf16.msrb.mxu0 %v3502_v32 }
  0xa7   : > { %v1341_v37 = vunpack.c.h.b16 %v4770_v15  ;;  %v1345_v27 = vunpack.c.h.b16 %v4771_v51  ;;  %v1469_v62 = vunpack.c.h.b16 %v3440_v41  ;;  %v1473_v53 = vunpack.c.h.b16 %v3449_v45  ;;  %1723 = vmatpush.bf16.msrb.mxu2 %v1061_v14  ;;  %v2583_v41 = vld [vmem:[%s4619_s1 + $0x38] sm:$0xf]  ;;  %v2651_v45 = vld [vmem:[%s4619_s1 + $0x48] sm:$0xf0] }
  0xa8   : > { %v518_v58 = vmul.f32 %v3672_v50, %v3662_v38  ;;  %v519_v24 = vmul.f32 %v3674_v26, %v3666_v23  ;;  %v522_v4 = vmul.f32 %v3676_v54, %v3668_v47  ;;  %v523_v32 = vmul.f32 %v3678_v60, %v3670_v22  ;;  %1742 = vmatpush.bf16.msrb.mxu3 %v1221_v0 }
  0xa9   : > { %v3707_v14 = vpack.c.b16 %v1345_v27, %v1341_v37  ;;  %v3709_v59 = vpack.c.b16 %v1473_v53, %v1469_v62  ;;  %v3713_v61 = vunpack.c.l.bf16 %v389_v1  ;;  %1705 = vmatpush.bf16.msrb.mxu1 %v2440_v10  ;;  %v3722_v0 = vunpack.c.h.bf16 %v389_v1  ;;  %v4775_v27 = vld [vmem:[#allocation23_spill] sm:$0xff]  ;;  %v3738_v10 = vld [vmem:[%s2949_s23 + $0xb4] sm:$0xf0] }
  0xaa   : > { %v3718_v55 = vpack.c.bf16 %v519_v24, %v518_v58  ;;  %v3720_v39 = vpack.c.bf16 %v523_v32, %v522_v4  ;;  %v3724_v19 = vunpack.c.l.bf16 %v391_v21  ;;  %1687 = vmatpush.bf16.msrb.mxu0 %v3556_v28  ;;  %v3727_v15 = vunpack.c.h.bf16 %v391_v21  ;;  %v385_v1 = vld [vmem:[%s2949_s23 + $0xa8] sm:$0xff]  ;;  %v4776_v24 = vld [vmem:[#allocation24_spill] sm:$0xff]  ;;  %v387_v32 = vld [vmem:[%s2949_s23 + $0xb8] sm:$0xff] }
  0xab   : > { %v510_v37 = vmul.f32 %v3672_v50, %v3713_v61  ;;  %v3731_v51 = vor.u32 %v2651_v45, %v2583_v41  ;;  %v1333_v36 = vunpack.c.h.b16 %v4775_v27  ;;  %1724 = vmatpush.bf16.msrb.mxu2 %v3623_v63  ;;  %v511_v53 = vmul.f32 %v3674_v26, %v3722_v0 }
  0xac   : > { %4772 = vst [vmem:[#allocation19_spill] sm:$0xff] %v3718_v55  ;;  %v1046_v28 = vunpack.c.l.b16 %v3718_v55  ;;  %v1050_v62 = vunpack.c.l.b16 %v3720_v39  ;;  %v514_v21 = vmul.f32 %v3676_v54, %v3724_v19  ;;  %1743 = vmatpush.bf16.msrb.mxu3 %v3636_v2  ;;  %v515_v58 = vmul.f32 %v3678_v60, %v3727_v15 }
  0xad   : > { %4773 = vst [vmem:[#allocation20_spill] sm:$0xff] %v3720_v39  ;;  %v1337_v4 = vunpack.c.h.b16 %v4776_v24  ;;  %v1461_v63 = vunpack.c.h.b16 %v3463_v17  ;;  %1688 = vmatmul.bf16.vlgmr.msrb.gmra.mxu0 %v3605_v7  ;;  %1706 = vmatpush.bf16.msrb.mxu1 %v2424_v16  ;;  %v3760_v45 = vpack.c.bf16 %v511_v53, %v510_v37  ;;  %v3764_v27 = vunpack.c.l.bf16 %v385_v1 }
  0xae   : > { %4774 = vst [vmem:[#allocation21_spill] sm:$0xff] %v3731_v51  ;;  %1756 = vmatpush.bf16.msra.mxu0 %v3619_v8  ;;  %v1465_v8 = vunpack.c.h.b16 %v3465_v57  ;;  %v1082_v41 = vpack.c.b16 %v1050_v62, %v1046_v28  ;;  %v3767_v17 = vpack.c.bf16 %v515_v58, %v514_v21  ;;  %v3773_v30 = vunpack.c.h.bf16 %v385_v1  ;;  %v381_v28 = vld [vmem:[%s2949_s23 + $0x88] sm:$0xff]  ;;  %v4779_v62 = vld [vmem:[#allocation28_spill] sm:$0xff]  ;;  %v4781_v21 = vld [vmem:[#allocation29_spill] sm:$0xff] }
  0xaf   : > { %4777 = vst [vmem:[#allocation22_spill] sm:$0xff] %v3760_v45  ;;  %v3769_v57 = vpack.c.b16 %v1337_v4, %v1333_v36  ;;  %1725 = vmatpush.bf16.msrb.mxu2 %v3643_v56  ;;  %v1038_v6 = vunpack.c.l.b16 %v3760_v45  ;;  %v3778_v16 = vunpack.c.l.bf16 %v387_v32  ;;  %v3780_v37 = vunpack.c.h.bf16 %v387_v32  ;;  %v3793_v4 = vld [vmem:[%s2949_s23 + $0x88] sm:$0xf] }
  0xb0   : > { %4778 = vst [vmem:[#allocation25_spill] sm:$0xff] %v3767_v17  ;;  %v3771_v24 = vpack.c.b16 %v1465_v8, %v1461_v63  ;;  %v502_v36 = vmul.f32 %v3713_v61, %v3764_v27  ;;  %1744 = vmatpush.bf16.msrb.mxu3 %v3656_v25  ;;  %1707 = vmatmul.bf16.vlgmr.msrb.gmra.mxu1 %v4779_v62  ;;  %v1042_v1 = vunpack.c.l.b16 %v3767_v17  ;;  %v1329_v58 = vunpack.c.h.b16 %v4781_v21  ;;  %v3796_v63 = vld [vmem:[%s2949_s23 + $0x94] sm:$0xf0] }
  0xb1   : > { %1775 = vmatpush.bf16.msra.mxu1 %v3651_v5  ;;  %v503_v56 = vmul.f32 %v3722_v0, %v3773_v30  ;;  %v506_v25 = vmul.f32 %v3724_v19, %v3778_v16  ;;  %v507_v8 = vmul.f32 %v3727_v15, %v3780_v37  ;;  %v1453_v32 = vunpack.c.h.b16 %v3504_v12  ;;  %v383_v21 = vld [vmem:[%s2949_s23 + $0x98] sm:$0xff] }
  0xb2   : > { %1757 = vmatpush.bf16.msra.mxu0 %v3658_v46  ;;  %v4780_v46 = vld [vmem:[#allocation27_spill] sm:$0xff]  ;;  %1726 = vmatmul.bf16.vlgmr.msrb.gmra.mxu2 %v3437_v35  ;;  %v1078_v13 = vpack.c.b16 %v1042_v1, %v1038_v6  ;;  %v2492_v2 = vor.u32 %v3796_v63, %v3793_v4  ;;  %v3824_v3 = vunpack.c.h.bf16 %v381_v28  ;;  %v3869_v17 = vld [vmem:[%s2949_s23 + $0x54] sm:$0xf0] }
  0xb3   : > { %v1325_v53 = vunpack.c.h.b16 %v4780_v46  ;;  %1794 = vmatpush.bf16.msra.mxu2 %v2540_v11  ;;  %v1457_v46 = vunpack.c.h.b16 %v3507_v43  ;;  %v3810_v20 = vpack.c.bf16 %v503_v56, %v502_v36  ;;  %1745 = vmatmul.bf16.vlgmr.msrb.gmra.mxu3 %v3442_v44  ;;  %v3818_v12 = vpack.c.bf16 %v507_v8, %v506_v25  ;;  %v3827_v6 = vld [vmem:[%s2949_s23 + $0x68] sm:$0xf]  ;;  %v3830_v36 = vld [vmem:[%s2949_s23 + $0x74] sm:$0xf0] }
  0xb4   : > { %1813 = vmatpush.bf16.msra.mxu3 %v1082_v41  ;;  %v3814_v41 = vunpack.c.l.bf16 %v381_v28  ;;  %v377_v1 = vld [vmem:[%s2949_s23 + $0x68] sm:$0xff]  ;;  %v4784_v25 = vor.u32 %v3684_v18, %v3681_v48  ;;  %v495_v4 = vmul.f32 %v3773_v30, %v3824_v3 }
  0xb5   : > { %1776 = vmatpush.bf16.msra.mxu1 %v3709_v59  ;;  %4782 = vst [vmem:[#allocation26_spill] sm:$0xff] %v3810_v20  ;;  %v3812_v11 = vpack.c.b16 %v1329_v58, %v1325_v53  ;;  %v3820_v43 = vpack.c.b16 %v1457_v46, %v1453_v32  ;;  %v1030_v56 = vunpack.c.l.b16 %v3810_v20  ;;  %v3834_v53 = vunpack.c.l.bf16 %v383_v21  ;;  %v4785_v63 = vld [vmem:[#allocation31_spill] sm:$0xff]  ;;  %v4786_v32 = vld [vmem:[#allocation32_spill] sm:$0xff] }
  0xb6   : > { %1758 = vmatpush.bf16.msra.mxu0 %v3664_v40  ;;  %4783 = vst [vmem:[#allocation30_spill] sm:$0xff] %v3818_v12  ;;  %v3836_v40 = vunpack.c.h.bf16 %v383_v21  ;;  %v494_v58 = vmul.f32 %v3764_v27, %v3814_v41  ;;  %v1034_v28 = vunpack.c.l.b16 %v3818_v12  ;;  %v1317_v8 = vunpack.c.h.b16 %v4785_v63  ;;  %v379_v21 = vld [vmem:[%s2949_s23 + $0x78] sm:$0xff]  ;;  %v3866_v20 = vld [vmem:[%s2949_s23 + $0x48] sm:$0xf] }
  0xb7   : > { %1795 = vmatpush.bf16.msra.mxu2 %v4784_v25  ;;  %v1321_v46 = vunpack.c.h.b16 %v4786_v32  ;;  %v498_v48 = vmul.f32 %v3778_v16, %v3834_v53  ;;  %v3856_v25 = vunpack.c.l.bf16 %v377_v1  ;;  %v3863_v12 = vunpack.c.h.bf16 %v377_v1 }
  0xb8   : > { %1814 = vmatpush.bf16.msra.mxu3 %v1078_v13  ;;  %v499_v18 = vmul.f32 %v3780_v37, %v3836_v40  ;;  %v2476_v13 = vor.u32 %v3830_v36, %v3827_v6  ;;  %v1074_v63 = vpack.c.b16 %v1034_v28, %v1030_v56  ;;  %v3859_v44 = vpack.c.bf16 %v495_v4, %v494_v58  ;;  %v373_v36 = vld [vmem:[%s2949_s23 + $0x48] sm:$0xff] }
  0xb9   : > { %1777 = vmatpush.bf16.msra.mxu1 %v3771_v24  ;;  %v3861_v32 = vpack.c.b16 %v1321_v46, %v1317_v8  ;;  %v3873_v39 = vunpack.c.l.bf16 %v379_v21  ;;  %v3875_v6 = vunpack.c.h.bf16 %v379_v21  ;;  %v4789_v1 = vor.u32 %v3738_v10, %v3735_v31  ;;  %v375_v8 = vld [vmem:[%s2949_s23 + $0x58] sm:$0xff] }
  0xba   : > { %1759 = vmatpush.bf16.msra.mxu0 %v3707_v14  ;;  %4787 = vst [vmem:[#allocation7_spill] sm:$0xff] %v3859_v44  ;;  %v3871_v45 = vpack.c.bf16 %v499_v18, %v498_v48  ;;  %v486_v14 = vmul.f32 %v3814_v41, %v3856_v25  ;;  %v1022_v56 = vunpack.c.l.b16 %v3859_v44  ;;  %v487_v58 = vmul.f32 %v3824_v3, %v3863_v12  ;;  %v3898_v48 = vld [vmem:[%s2949_s23 + $0x28] sm:$0xf] }
  0xbb   : > { %1796 = vmatpush.bf16.msra.mxu2 %v4789_v1  ;;  %v1309_v28 = vunpack.c.h.b16 %v3426_v52  ;;  %v1313_v4 = vunpack.c.h.b16 %v3433_v34  ;;  %v490_v31 = vmul.f32 %v3834_v53, %v3873_v39  ;;  %v491_v10 = vmul.f32 %v3836_v40, %v3875_v6  ;;  %v3901_v52 = vld [vmem:[%s2949_s23 + $0x34] sm:$0xf0] }
  0xbc   : > { %4788 = vst [vmem:[#allocation8_spill] sm:$0xff] %v3871_v45  ;;  %1815 = vmatpush.bf16.msra.mxu3 %v1074_v63  ;;  %v1026_v46 = vunpack.c.l.b16 %v3871_v45  ;;  %v2460_v21 = vor.u32 %v3869_v17, %v3866_v20  ;;  %v3904_v34 = vpack.c.bf16 %v487_v58, %v486_v14  ;;  %v3908_v63 = vunpack.c.l.bf16 %v373_v36  ;;  %v369_v45 = vld [vmem:[%s2949_s23 + $0x28] sm:$0xff]  ;;  %v371_v20 = vld [vmem:[%s2949_s23 + $0x38] sm:$0xff] }
  0xbd   : > { %1778 = vmatpush.bf16.msra.mxu1 %v3820_v43  ;;  %v3906_v18 = vpack.c.b16 %v1313_v4, %v1309_v28  ;;  %v3910_v1 = vunpack.c.h.bf16 %v373_v36  ;;  %v3913_v55 = vpack.c.bf16 %v491_v10, %v490_v31  ;;  %v3915_v49 = vunpack.c.l.bf16 %v375_v8  ;;  %1693 = vmatmul.bf16.gmra.mxu0 %v3731_v51 }
  0xbe   : > { %1760 = vmatpush.bf16.msra.mxu0 %v3769_v57  ;;  %4790 = vst [vmem:[#allocation35_spill] sm:$0xff] %v3904_v34  ;;  %v1070_v44 = vpack.c.b16 %v1026_v46, %v1022_v56  ;;  %v3917_v17 = vunpack.c.h.bf16 %v375_v8  ;;  %v1014_v57 = vunpack.c.l.b16 %v3904_v34  ;;  %v478_v14 = vmul.f32 %v3856_v25, %v3908_v63 }
  0xbf   : > { %4791 = vst [vmem:[#allocation36_spill] sm:$0xff] %v3913_v55  ;;  %1797 = vmatpush.bf16.msra.mxu2 %v2492_v2  ;;  %v479_v36 = vmul.f32 %v3863_v12, %v3910_v1  ;;  %v2444_v56 = vor.u32 %v3901_v52, %v3898_v48  ;;  %v1018_v58 = vunpack.c.l.b16 %v3913_v55  ;;  %v482_v2 = vmul.f32 %v3873_v39, %v3915_v49 }
  0xc0   : > { %1816 = vmatpush.bf16.msra.mxu3 %v1070_v44  ;;  %v483_v28 = vmul.f32 %v3875_v6, %v3917_v17  ;;  %v3934_v4 = vunpack.c.l.bf16 %v369_v45  ;;  %v3939_v46 = vunpack.c.h.bf16 %v369_v45  ;;  %v3941_v44 = vunpack.c.l.bf16 %v371_v20  ;;  %1712 = vmatmul.bf16.gmra.mxu1 %v3511_v33 }
  0xc1   : > { %1779 = vmatpush.bf16.msra.mxu1 %v3651_v5  ;;  %v3937_v8 = vpack.c.bf16 %v479_v36, %v478_v14  ;;  %v3943_v5 = vunpack.c.h.bf16 %v371_v20  ;;  %v1066_v31 = vpack.c.b16 %v1018_v58, %v1014_v57  ;;  %v3956_v14 = vld [vmem:[%s2949_s23 + $0x14] sm:$0xf0] }
  0xc2   : > { %1761 = vmatpush.bf16.msra.mxu0 %v3812_v11  ;;  %v3946_v10 = vpack.c.bf16 %v483_v28, %v482_v2  ;;  %v470_v48 = vmul.f32 %v3908_v63, %v3934_v4  ;;  %v614_v52 = vmul.f32 %v3672_v50, %v3934_v4  ;;  %v3953_v11 = vld [vmem:[%s2949_s23 + $0x8] sm:$0xf]  ;;  %v471_v20 = vmul.f32 %v3910_v1, %v3939_v46 }
  0xc3   : > { %4792 = vst [vmem:[#allocation9_spill] sm:$0xff] %v3937_v8  ;;  %1798 = vmatpush.bf16.msra.mxu2 %v2476_v13  ;;  %v1006_v45 = vunpack.c.l.b16 %v3937_v8  ;;  %v474_v57 = vmul.f32 %v3915_v49, %v3941_v44  ;;  %v475_v36 = vmul.f32 %v3917_v17, %v3943_v5  ;;  %v615_v2 = vmul.f32 %v3674_v26, %v3939_v46 }
  0xc4   : > { %4793 = vst [vmem:[#allocation10_spill] sm:$0xff] %v3946_v10  ;;  %1731 = vmatmul.bf16.gmra.mxu2 %v3566_v42  ;;  %1817 = vmatpush.bf16.msra.mxu3 %v1066_v31  ;;  %v1010_v58 = vunpack.c.l.b16 %v3946_v10  ;;  %v618_v13 = vmul.f32 %v3676_v54, %v3941_v44  ;;  %v619_v28 = vmul.f32 %v3678_v60, %v3943_v5 }
  0xc5   : > { %1750 = vmatmul.bf16.gmra.mxu3 %v3568_v29  ;;  %v3975_v8 = vpack.c.bf16 %v471_v20, %v470_v48  ;;  %v3977_v55 = vpack.c.bf16 %v475_v36, %v474_v57  ;;  %v2428_v31 = vor.u32 %v3956_v14, %v3953_v11  ;;  %1780 = vmatpush.bf16.msra.mxu1 %v3709_v59  ;;  %v2541_v29 = vld [vmem:[%s2949_s23 + $0xf8] sm:$0xf0] }
  0xc6   : > { %1762 = vmatpush.bf16.msra.mxu0 %v3861_v32  ;;  %v1062_v10 = vpack.c.b16 %v1010_v58, %v1006_v45  ;;  %v3982_v34 = vpack.c.bf16 %v615_v2, %v614_v52  ;;  %v3984_v42 = vpack.c.bf16 %v619_v28, %v618_v13  ;;  %v462_v33 = vmul.f32 %v3934_v4, %v3662_v38 }
  0xc7   : > { %4794 = vst [vmem:[#allocation11_spill] sm:$0xff] %v3975_v8  ;;  %1799 = vmatpush.bf16.msra.mxu2 %v2460_v21  ;;  %v998_v32 = vunpack.c.l.b16 %v3975_v8  ;;  %v1002_v48 = vunpack.c.l.b16 %v3977_v55  ;;  %v463_v20 = vmul.f32 %v3939_v46, %v3666_v23  ;;  %v466_v11 = vmul.f32 %v3941_v44, %v3668_v47 }
  0xc8   : > { %4795 = vst [vmem:[#allocation12_spill] sm:$0xff] %v3977_v55  ;;  %1818 = vmatpush.bf16.msra.mxu3 %v1062_v10  ;;  %v1206_v59 = vunpack.c.l.b16 %v3982_v34  ;;  %v1210_v52 = vunpack.c.l.b16 %v3984_v42  ;;  %v467_v14 = vmul.f32 %v3943_v5, %v3670_v22  ;;  %v606_v21 = vmul.f32 %v3713_v61, %v3662_v38 }
  0xc9   : > { %v1058_v45 = vpack.c.b16 %v1002_v48, %v998_v32  ;;  %v4001_v57 = vpack.c.bf16 %v463_v20, %v462_v33  ;;  %v607_v36 = vmul.f32 %v3722_v0, %v3666_v23  ;;  %v610_v10 = vmul.f32 %v3724_v19, %v3668_v47  ;;  %1781 = vmatpush.bf16.msra.mxu1 %v3771_v24 }
  0xca   : > { %1763 = vmatpush.bf16.msra.mxu0 %v3906_v18  ;;  %v1242_v58 = vpack.c.b16 %v1210_v52, %v1206_v59  ;;  %v4008_v2 = vpack.c.bf16 %v467_v14, %v466_v11  ;;  %v611_v13 = vmul.f32 %v3727_v15, %v3670_v22  ;;  %v598_v18 = vmul.f32 %v3672_v50, %v3764_v27 }
  0xcb   : > { %4796 = vst [vmem:[#allocation33_spill] sm:$0xff] %v4001_v57  ;;  %1800 = vmatpush.bf16.msra.mxu2 %v2444_v56  ;;  %v990_v33 = vunpack.c.l.b16 %v4001_v57  ;;  %v4015_v28 = vpack.c.bf16 %v607_v36, %v606_v21  ;;  %v599_v32 = vmul.f32 %v3674_v26, %v3773_v30  ;;  %v602_v24 = vmul.f32 %v3676_v54, %v3778_v16 }
  0xcc   : > { %4797 = vst [vmem:[#allocation34_spill] sm:$0xff] %v4008_v2  ;;  %1819 = vmatpush.bf16.msra.mxu3 %v1058_v45  ;;  %v994_v48 = vunpack.c.l.b16 %v4008_v2  ;;  %v4022_v20 = vpack.c.bf16 %v611_v13, %v610_v10  ;;  %v603_v56 = vmul.f32 %v3678_v60, %v3780_v37  ;;  %v710_v11 = vmul.f32 %v3672_v50, %v3908_v63  ;;  %v2639_v13 = vld [vmem:[%s2949_s23 + $0xec] sm:$0xf] }
  0xcd   : > { %v1198_v59 = vunpack.c.l.b16 %v4015_v28  ;;  %v4029_v52 = vpack.c.bf16 %v599_v32, %v598_v18  ;;  %v711_v14 = vmul.f32 %v3674_v26, %v3910_v1  ;;  %v714_v21 = vmul.f32 %v3676_v54, %v3915_v49  ;;  %1782 = vmatpush.bf16.msra.mxu1 %v3820_v43  ;;  %1764 = vmatmul.bf16.vlgmr.msra.gmra.mxu0 %v3444_v9 }
  0xce   : > { %1832 = vmatpush.bf16.msrb.mxu0 %v1242_v58  ;;  %v1054_v45 = vpack.c.b16 %v994_v48, %v990_v33  ;;  %v1202_v36 = vunpack.c.l.b16 %v4022_v20  ;;  %v4037_v10 = vpack.c.bf16 %v603_v56, %v602_v24  ;;  %v715_v58 = vmul.f32 %v3678_v60, %v3917_v17 }
  0xcf   : > { %4798 = vst [vmem:[#allocation17_spill] sm:$0xff] %v4029_v52  ;;  %1801 = vmatpush.bf16.msra.mxu2 %v2428_v31  ;;  %v1190_v18 = vunpack.c.l.b16 %v4029_v52  ;;  %v4045_v32 = vpack.c.bf16 %v711_v14, %v710_v11  ;;  %v774_v43 = vmul.f32 %v3672_v50, %v3856_v25  ;;  %v775_v33 = vmul.f32 %v3674_v26, %v3863_v12 }
  0xd0   : > { %4799 = vst [vmem:[#allocation18_spill] sm:$0xff] %v4037_v10  ;;  %1820 = vmatpush.bf16.msra.mxu3 %v1054_v45  ;;  %v1238_v24 = vpack.c.b16 %v1202_v36, %v1198_v59  ;;  %v1194_v48 = vunpack.c.l.b16 %v4037_v10  ;;  %v4052_v56 = vpack.c.bf16 %v715_v58, %v714_v21  ;;  %v778_v2 = vmul.f32 %v3676_v54, %v3873_v39 }
  0xd1   : > { %v1366_v31 = vunpack.c.l.b16 %v4045_v32  ;;  %v779_v11 = vmul.f32 %v3678_v60, %v3875_v6  ;;  %v4059_v14 = vpack.c.bf16 %v775_v33, %v774_v43  ;;  %v2544_v57 = vor.u32 %v2639_v13, %v2541_v29  ;;  %1783 = vmatmul.bf16.vlgmr.msra.gmra.mxu1 %v3605_v7 }
  0xd2   : > { %1833 = vmatpush.bf16.msrb.mxu0 %v1238_v24  ;;  %v1234_v45 = vpack.c.b16 %v1194_v48, %v1190_v18  ;;  %v1370_v59 = vunpack.c.l.b16 %v4052_v56  ;;  %v590_v21 = vmul.f32 %v3713_v61, %v3814_v41  ;;  %v591_v36 = vmul.f32 %v3722_v0, %v3824_v3 }
  0xd3   : > { %v4067_v58 = vpack.c.bf16 %v779_v11, %v778_v2  ;;  %v1478_v43 = vunpack.c.l.b16 %v4059_v14  ;;  %v594_v29 = vmul.f32 %v3724_v19, %v3834_v53  ;;  %v595_v13 = vmul.f32 %v3727_v15, %v3836_v40 }
  0xd4   : > { %1889 = vmatpush.bf16.msrb.mxu3 %v2544_v57  ;;  %1802 = vmatmul.bf16.vlgmr.msra.gmra.mxu2 %v4779_v62  ;;  %v1402_v18 = vpack.c.b16 %v1370_v59, %v1366_v31  ;;  %v4075_v33 = vpack.c.bf16 %v591_v36, %v590_v21  ;;  %v702_v24 = vmul.f32 %v3713_v61, %v3934_v4  ;;  %v2635_v59 = vld [vmem:[%s2949_s23 + $0xcc] sm:$0xf]  ;;  %v2525_v21 = vld [vmem:[%s2949_s23 + $0xd8] sm:$0xf0] }
  0xd5   : > { %v703_v2 = vmul.f32 %v3722_v0, %v3939_v46  ;;  %1821 = vmatmul.bf16.vlgmr.msra.gmra.mxu3 %v3437_v35  ;;  %v1482_v57 = vunpack.c.l.b16 %v4067_v58  ;;  %v4083_v48 = vpack.c.bf16 %v595_v13, %v594_v29  ;;  %v706_v11 = vmul.f32 %v3724_v19, %v3941_v44 }
  0xd6   : > { %4800 = vst [vmem:[#allocation23_spill] sm:$0xff] %v4075_v33  ;;  %v707_v31 = vmul.f32 %v3727_v15, %v3943_v5  ;;  %1834 = vmatpush.bf16.msrb.mxu0 %v1234_v45  ;;  %1851 = vmatpush.bf16.msrb.mxu1 %v1402_v18  ;;  %v1182_v36 = vunpack.c.l.b16 %v4075_v33  ;;  %v766_v35 = vmul.f32 %v3713_v61, %v3908_v63 }
  0xd7   : > { %4801 = vst [vmem:[#allocation24_spill] sm:$0xff] %v4083_v48  ;;  %v4092_v55 = vpack.c.bf16 %v703_v2, %v702_v24  ;;  %v767_v29 = vmul.f32 %v3722_v0, %v3910_v1  ;;  %v4098_v13 = vpack.c.b16 %v1482_v57, %v1478_v43  ;;  %v1186_v8 = vunpack.c.l.b16 %v4083_v48 }
  0xd8   : > { %v4101_v9 = vpack.c.bf16 %v707_v31, %v706_v11  ;;  %v770_v45 = vmul.f32 %v3724_v19, %v3915_v49  ;;  %v771_v24 = vmul.f32 %v3727_v15, %v3917_v17  ;;  %v2528_v33 = vor.u32 %v2635_v59, %v2525_v21 }
  0xd9   : > { %v1358_v18 = vunpack.c.l.b16 %v4092_v55  ;;  %v4108_v2 = vpack.c.bf16 %v767_v29, %v766_v35  ;;  %1870 = vmatpush.bf16.msrb.mxu2 %v4098_v13  ;;  %v1230_v7 = vpack.c.b16 %v1186_v8, %v1182_v36  ;;  %v582_v57 = vmul.f32 %v3764_v27, %v3856_v25 }
  0xda   : > { %4802 = vst [vmem:[#allocation28_spill] sm:$0xff] %v4101_v9  ;;  %v1362_v43 = vunpack.c.l.b16 %v4101_v9  ;;  %v583_v11 = vmul.f32 %v3773_v30, %v3863_v12  ;;  %v4116_v31 = vpack.c.bf16 %v771_v24, %v770_v45  ;;  %1890 = vmatpush.bf16.msrb.mxu3 %v2528_v33  ;;  %v586_v35 = vmul.f32 %v3778_v16, %v3873_v39 }
  0xdb   : > { %4803 = vst [vmem:[#allocation27_spill] sm:$0xff] %v4108_v2  ;;  %v1470_v48 = vunpack.c.l.b16 %v4108_v2  ;;  %v587_v8 = vmul.f32 %v3780_v37, %v3875_v6  ;;  %1835 = vmatpush.bf16.msrb.mxu0 %v1230_v7  ;;  %v694_v36 = vmul.f32 %v3764_v27, %v3662_v38  ;;  %v695_v29 = vmul.f32 %v3773_v30, %v3666_v23  ;;  %v2631_v7 = vld [vmem:[%s2949_s23 + $0xac] sm:$0xf] }
  0xdc   : > { %4804 = vst [vmem:[#allocation29_spill] sm:$0xff] %v4116_v31  ;;  %v1398_v59 = vpack.c.b16 %v1362_v43, %v1358_v18  ;;  %v4123_v21 = vpack.c.bf16 %v583_v11, %v582_v57  ;;  %v1474_v45 = vunpack.c.l.b16 %v4116_v31  ;;  %v698_v33 = vmul.f32 %v3778_v16, %v3668_v47  ;;  %v2509_v18 = vld [vmem:[%s2949_s23 + $0xb8] sm:$0xf0] }
  0xdd   : > { %v4130_v24 = vpack.c.bf16 %v587_v8, %v586_v35  ;;  %v699_v10 = vmul.f32 %v3780_v37, %v3670_v22  ;;  %v4139_v57 = vpack.c.bf16 %v695_v29, %v694_v36  ;;  %v758_v11 = vmul.f32 %v3764_v27, %v3934_v4 }
  0xde   : > { %4805 = vst [vmem:[#allocation31_spill] sm:$0xff] %v4123_v21  ;;  %1852 = vmatpush.bf16.msrb.mxu1 %v1398_v59  ;;  %v1174_v43 = vunpack.c.l.b16 %v4123_v21  ;;  %v759_v35 = vmul.f32 %v3773_v30, %v3939_v46  ;;  %v4145_v8 = vpack.c.b16 %v1474_v45, %v1470_v48  ;;  %v762_v2 = vmul.f32 %v3778_v16, %v3941_v44  ;;  %v4808_v59 = vld [vmem:[#allocation15_spill] sm:$0xff] }
  0xdf   : > { %4806 = vst [vmem:[#allocation32_spill] sm:$0xff] %v4130_v24  ;;  %v1178_v52 = vunpack.c.l.b16 %v4130_v24  ;;  %v4148_v31 = vpack.c.bf16 %v699_v10, %v698_v33  ;;  %1769 = vmatmul.bf16.gmra.mxu0 %v4808_v59  ;;  %v1350_v36 = vunpack.c.l.b16 %v4139_v57  ;;  %v763_v29 = vmul.f32 %v3780_v37, %v3943_v5 }
  0xe0   : > { %v4156_v21 = vpack.c.bf16 %v759_v35, %v758_v11  ;;  %v2512_v9 = vor.u32 %v2631_v7, %v2509_v18  ;;  %1871 = vmatpush.bf16.msrb.mxu2 %v4145_v8  ;;  %v574_v10 = vmul.f32 %v3814_v41, %v3908_v63  ;;  %v575_v33 = vmul.f32 %v3824_v3, %v3910_v1 }
  0xe1   : > { %4807 = vst [vmem:[#allocation41_spill] sm:$0xff] %v4148_v31  ;;  %v1226_v48 = vpack.c.b16 %v1178_v52, %v1174_v43  ;;  %v1354_v45 = vunpack.c.l.b16 %v4148_v31  ;;  %v4164_v59 = vpack.c.bf16 %v763_v29, %v762_v2  ;;  %v578_v7 = vmul.f32 %v3834_v53, %v3915_v49  ;;  %1788 = vmatmul.bf16.gmra.mxu1 %v3731_v51 }
  0xe2   : > { %v1462_v24 = vunpack.c.l.b16 %v4156_v21  ;;  %1891 = vmatpush.bf16.msrb.mxu3 %v2512_v9  ;;  %v579_v52 = vmul.f32 %v3836_v40, %v3917_v17  ;;  %v4171_v43 = vpack.c.bf16 %v575_v33, %v574_v10  ;;  %v686_v11 = vmul.f32 %v3672_v50, %v3814_v41  ;;  %v4811_v33 = vld [vmem:[#allocation40_spill] sm:$0xff] }
  0xe3   : > { %1836 = vmatpush.bf16.msrb.mxu0 %v1226_v48  ;;  %v1394_v18 = vpack.c.b16 %v1354_v45, %v1350_v36  ;;  %v687_v2 = vmul.f32 %v3674_v26, %v3824_v3  ;;  %v1466_v35 = vunpack.c.l.b16 %v4164_v59  ;;  %v690_v9 = vmul.f32 %v3676_v54, %v3834_v53  ;;  %v2627_v48 = vld [vmem:[%s2949_s23 + $0x8c] sm:$0xf]  ;;  %v2493_v36 = vld [vmem:[%s2949_s23 + $0x98] sm:$0xf0] }
  0xe4   : > { %4809 = vst [vmem:[#allocation42_spill] sm:$0xff] %v4171_v43  ;;  %v4178_v29 = vpack.c.bf16 %v579_v52, %v578_v7  ;;  %v691_v31 = vmul.f32 %v3678_v60, %v3836_v40  ;;  %v1166_v50 = vunpack.c.l.b16 %v4171_v43  ;;  %v750_v26 = vmul.f32 %v3814_v41, %v3662_v38  ;;  %1807 = vmatmul.bf16.gmra.mxu2 %v4811_v33 }
  0xe5   : > { %1853 = vmatpush.bf16.msrb.mxu1 %v1394_v18  ;;  %v4188_v45 = vpack.c.bf16 %v687_v2, %v686_v11  ;;  %v751_v10 = vmul.f32 %v3824_v3, %v3666_v23  ;;  %v4195_v54 = vpack.c.b16 %v1466_v35, %v1462_v24  ;;  %v754_v52 = vmul.f32 %v3834_v53, %v3668_v47  ;;  %v4813_v18 = vld [vmem:[#allocation13_spill] sm:$0xff] }
  0xe6   : > { %4810 = vst [vmem:[#allocation43_spill] sm:$0xff] %v4178_v29  ;;  %v1170_v60 = vunpack.c.l.b16 %v4178_v29  ;;  %v4198_v7 = vpack.c.bf16 %v691_v31, %v690_v9  ;;  %1826 = vmatmul.bf16.gmra.mxu3 %v4813_v18  ;;  %v755_v2 = vmul.f32 %v3836_v40, %v3670_v22  ;;  %v2496_v24 = vor.u32 %v2627_v48, %v2493_v36  ;;  %v2623_v36 = vld [vmem:[%s2949_s23 + $0x6c] sm:$0xf] }
  0xe7   : > { %v1342_v11 = vunpack.c.l.b16 %v4188_v45  ;;  %v4206_v51 = vpack.c.bf16 %v751_v10, %v750_v26  ;;  %1872 = vmatpush.bf16.msrb.mxu2 %v4195_v54  ;;  %v566_v9 = vmul.f32 %v3856_v25, %v3934_v4  ;;  %v567_v18 = vmul.f32 %v3863_v12, %v3939_v46 }
  0xe8   : > { %4812 = vst [vmem:[#allocation44_spill] sm:$0xff] %v4198_v7  ;;  %v1222_v35 = vpack.c.b16 %v1170_v60, %v1166_v50  ;;  %v1346_v31 = vunpack.c.l.b16 %v4198_v7  ;;  %v4214_v29 = vpack.c.bf16 %v755_v2, %v754_v52  ;;  %1892 = vmatpush.bf16.msrb.mxu3 %v2496_v24  ;;  %v570_v26 = vmul.f32 %v3873_v39, %v3941_v44  ;;  %v2477_v50 = vld [vmem:[%s2949_s23 + $0x78] sm:$0xf0] }
  0xe9   : > { %v1454_v43 = vunpack.c.l.b16 %v4206_v51  ;;  %v571_v48 = vmul.f32 %v3875_v6, %v3943_v5  ;;  %v4223_v60 = vpack.c.bf16 %v567_v18, %v566_v9  ;;  %v678_v52 = vmul.f32 %v3713_v61, %v3856_v25 }
  0xea   : > { %1837 = vmatpush.bf16.msrb.mxu0 %v1222_v35  ;;  %v1390_v10 = vpack.c.b16 %v1346_v31, %v1342_v11  ;;  %v679_v2 = vmul.f32 %v3722_v0, %v3863_v12  ;;  %v1458_v24 = vunpack.c.l.b16 %v4214_v29  ;;  %v682_v7 = vmul.f32 %v3724_v19, %v3873_v39 }
  0xeb   : > { %4814 = vst [vmem:[#allocation45_spill] sm:$0xff] %v4223_v60  ;;  %v4230_v33 = vpack.c.bf16 %v571_v48, %v570_v26  ;;  %v683_v11 = vmul.f32 %v3727_v15, %v3875_v6  ;;  %v1158_v18 = vunpack.c.l.b16 %v4223_v60  ;;  %v2480_v61 = vor.u32 %v2623_v36, %v2477_v50  ;;  %v2619_v48 = vld [vmem:[%s2949_s23 + $0x4c] sm:$0xf]  ;;  %v2461_v15 = vld [vmem:[%s2949_s23 + $0x58] sm:$0xf0] }
  0xec   : > { %1854 = vmatpush.bf16.msrb.mxu1 %v1390_v10  ;;  %v4237_v35 = vpack.c.bf16 %v679_v2, %v678_v52  ;;  %v558_v31 = vmul.f32 %v3908_v63, %v3662_v38  ;;  %v4241_v0 = vpack.c.b16 %v1458_v24, %v1454_v43  ;;  %v559_v19 = vmul.f32 %v3910_v1, %v3666_v23 }
  0xed   : > { %4815 = vst [vmem:[#allocation46_spill] sm:$0xff] %v4230_v33  ;;  %v1162_v9 = vunpack.c.l.b16 %v4230_v33  ;;  %v4244_v26 = vpack.c.bf16 %v683_v11, %v682_v7  ;;  %1893 = vmatpush.bf16.msrb.mxu3 %v2480_v61  ;;  %v562_v36 = vmul.f32 %v3915_v49, %v3668_v47  ;;  %v563_v43 = vmul.f32 %v3917_v17, %v3670_v22 }
  0xee   : > { %v1334_v10 = vunpack.c.l.b16 %v4237_v35  ;;  %v670_v7 = vmul.f32 %v3764_v27, %v3908_v63  ;;  %1873 = vmatpush.bf16.msrb.mxu2 %v4241_v0  ;;  %v4259_v2 = vpack.c.bf16 %v559_v19, %v558_v31  ;;  %v671_v24 = vmul.f32 %v3773_v30, %v3910_v1  ;;  %v2615_v27 = vld [vmem:[%s2949_s23 + $0x2c] sm:$0xf]  ;;  %v2445_v63 = vld [vmem:[%s2949_s23 + $0x38] sm:$0xf0] }
  0xef   : > { %v1218_v50 = vpack.c.b16 %v1162_v9, %v1158_v18  ;;  %v1338_v52 = vunpack.c.l.b16 %v4244_v26  ;;  %v4263_v11 = vpack.c.bf16 %v563_v43, %v562_v36  ;;  %v674_v61 = vmul.f32 %v3778_v16, %v3915_v49  ;;  %v4816_v19 = vld [vmem:[#allocation19_spill] sm:$0xff] }
  0xf0   : > { %v675_v33 = vmul.f32 %v3780_v37, %v3917_v17  ;;  %v2464_v60 = vor.u32 %v2619_v48, %v2461_v15  ;;  %v1150_v9 = vunpack.c.l.b16 %v4259_v2  ;;  %v4272_v31 = vpack.c.bf16 %v671_v24, %v670_v7 }
  0xf1   : > { %1838 = vmatpush.bf16.msrb.mxu0 %v1218_v50  ;;  %v1386_v18 = vpack.c.b16 %v1338_v52, %v1334_v10  ;;  %v662_v30 = vmul.f32 %v3814_v41, %v3934_v4  ;;  %v1154_v1 = vunpack.c.l.b16 %v4263_v11  ;;  %v663_v16 = vmul.f32 %v3824_v3, %v3939_v46  ;;  %v4817_v3 = vld [vmem:[#allocation20_spill] sm:$0xff]  ;;  %v2611_v10 = vld [vmem:[%s2949_s23 + $0xc] sm:$0xf] }
  0xf2   : > { %v4277_v49 = vpack.c.bf16 %v675_v33, %v674_v61  ;;  %1894 = vmatpush.bf16.msrb.mxu3 %v2464_v60  ;;  %v666_v37 = vmul.f32 %v3834_v53, %v3941_v44  ;;  %1874 = vmatpush.bf16.msrb.mxu2 %v4098_v13  ;;  %v1326_v17 = vunpack.c.l.b16 %v4272_v31  ;;  %v667_v41 = vmul.f32 %v3836_v40, %v3943_v5  ;;  %v2429_v53 = vld [vmem:[%s2949_s23 + $0x18] sm:$0xf0]  ;;  %v4820_v61 = vld [vmem:[#allocation26_spill] sm:$0xff]  ;;  %s2727_s23 = sshra.s32 %s2343_s16, 4  ;;  %s2728_s23 = int_to_ptr.hbm [resolvable:$true] %s2727_s23 }
  0xf3   : > { %1855 = vmatpush.bf16.msrb.mxu1 %v1386_v18  ;;  %v2448_v4 = vor.u32 %v2615_v27, %v2445_v63  ;;  %v1047_v48 = vunpack.c.h.b16 %v4816_v19  ;;  %v1214_v33 = vpack.c.b16 %v1154_v1, %v1150_v9  ;;  %v4289_v15 = vpack.c.bf16 %v663_v16, %v662_v30  ;;  %v4821_v63 = vld [vmem:[#allocation30_spill] sm:$0xff]  ;;  %s2729_s18 = scalar_lea.hbm %s2728_s23, 4  ;;  %p2734_p2 = scmp.lt.s32.totalorder %s2728_s23, %s4625_s7 }
  0xf4   : > { %v1330_v60 = vunpack.c.l.b16 %v4277_v49  ;;  %v1051_v46 = vunpack.c.h.b16 %v4817_v3  ;;  %v4294_v44 = vpack.c.bf16 %v667_v41, %v666_v37  ;;  %v654_v13 = vmul.f32 %v3856_v25, %v3662_v38  ;;  %p2730_p13 = scmp.ne.s32.totalorder %s2728_s23, %s2729_s18  ;;  %p2735_p3 = scmp.lt.s32.totalorder %s2733_s22, %s2729_s18 }
  0xf5   : > { %v655_v40 = vmul.f32 %v3863_v12, %v3666_v23  ;;  %v658_v5 = vmul.f32 %v3873_v39, %v3668_v47  ;;  %1839 = vmatpush.bf16.msrb.mxu0 %v1214_v33  ;;  %v1318_v43 = vunpack.c.l.b16 %v4289_v15  ;;  %v659_v50 = vmul.f32 %v3875_v6, %v3670_v22  ;;  %v4818_v23 = vld [vmem:[#allocation22_spill] sm:$0xff]  ;;  %v4819_v39 = vld [vmem:[#allocation25_spill] sm:$0xff] }
  0xf6   : > { %v1382_v36 = vpack.c.b16 %v1330_v60, %v1326_v17  ;;  %1895 = vmatpush.bf16.msrb.mxu3 %v2448_v4  ;;  %v1083_v7 = vpack.c.b16 %v1051_v46, %v1047_v48  ;;  %1875 = vmatpush.bf16.msrb.mxu2 %v4145_v8  ;;  %v1322_v52 = vunpack.c.l.b16 %v4294_v44  ;;  %v2432_v25 = vor.u32 %v2611_v10, %v2429_v53  ;;  %v4822_v22 = vld [vmem:[#allocation38_spill] sm:$0xff]  ;;  %v4824_v60 = vld [vmem:[#allocation8_spill] sm:$0xff]  ;;  %p2731_p0 = pnand %p2730_p13, %p2859_p6  ;;  %p2736_p4 = por %p2735_p3, %p2734_p2 }
  0xf7   : > { %v4307_v38 = vpack.c.bf16 %v655_v40, %v654_v13  ;;  %v1039_v12 = vunpack.c.h.b16 %v4818_v23  ;;  %v4310_v47 = vpack.c.bf16 %v659_v50, %v658_v5  ;;  %v1043_v24 = vunpack.c.h.b16 %v4819_v39  ;;  %v4826_v13 = vld [vmem:[#allocation27_spill] sm:$0xff]  ;;  %v4827_v5 = vld [vmem:[#allocation29_spill] sm:$0xff] }
  0xf8   : > { %1856 = vmatpush.bf16.msrb.mxu1 %v1382_v36  ;;  %v1031_v27 = vunpack.c.h.b16 %v4820_v61  ;;  %v1035_v18 = vunpack.c.h.b16 %v4821_v63  ;;  %1840 = vmatmul.bf16.vlgmr.msrb.gmra.mxu0 %v4822_v22  ;;  %v1378_v6 = vpack.c.b16 %v1322_v52, %v1318_v43  ;;  %v1207_v9 = vunpack.c.h.b16 %v3982_v34  ;;  %v4829_v43 = vld [vmem:[#allocation36_spill] sm:$0xff]  ;;  %v4833_v63 = vld [vmem:[#allocation41_spill] sm:$0xff]  ;;  %p2732_p1 = pneg %p2731_p0 }
  0xf9   : > { %1908 = vmatpush.bf16.msra.mxu0 %v1083_v7  ;;  %v1310_v8 = vunpack.c.l.b16 %v4307_v38  ;;  %v1211_v30 = vunpack.c.h.b16 %v3984_v42  ;;  %v1314_v1 = vunpack.c.l.b16 %v4310_v47  ;;  %v1079_v16 = vpack.c.b16 %v1043_v24, %v1039_v12  ;;  %v4823_v42 = vld [vmem:[#allocation7_spill] sm:$0xff]  ;;  %v4832_v61 = vld [vmem:[#allocation16_spill] sm:$0xff] }
  0xfa   : > { %1896 = vmatpush.bf16.msrb.mxu3 %v2432_v25  ;;  %v1075_v37 = vpack.c.b16 %v1035_v18, %v1031_v27  ;;  %v1367_v17 = vunpack.c.h.b16 %v4045_v32  ;;  %1876 = vmatpush.bf16.msrb.mxu2 %v4195_v54  ;;  %v1371_v4 = vunpack.c.h.b16 %v4052_v56  ;;  %v1479_v19 = vunpack.c.h.b16 %v4059_v14  ;;  %v4831_v25 = vld [vmem:[#allocation18_spill] sm:$0xff]  ;;  %p2737_p5 = pnand %p2736_p4, %p2732_p1 }
  0xfb   : > { %v1243_v41 = vpack.c.b16 %v1211_v30, %v1207_v9  ;;  %v1483_v48 = vunpack.c.h.b16 %v4067_v58  ;;  %v1374_v34 = vpack.c.b16 %v1314_v1, %v1310_v8  ;;  %v1023_v33 = vunpack.c.h.b16 %v4823_v42  ;;  %v4825_v58 = vld [vmem:[#allocation28_spill] sm:$0xff]  ;;  %v4835_v9 = vld [vmem:[#allocation10_spill] sm:$0xff]  ;;  %v4836_v1 = vld [vmem:[#allocation39_spill] sm:$0xff] }
  0xfc   : > { %1857 = vmatpush.bf16.msrb.mxu1 %v1378_v6  ;;  %v1027_v3 = vunpack.c.h.b16 %v4824_v60  ;;  %v1199_v46 = vunpack.c.h.b16 %v4015_v28  ;;  %v1403_v32 = vpack.c.b16 %v1371_v4, %v1367_v17  ;;  %v1203_v56 = vunpack.c.h.b16 %v4022_v20  ;;  %v4828_v28 = vld [vmem:[#allocation35_spill] sm:$0xff]  ;;  %v4834_v6 = vld [vmem:[#allocation9_spill] sm:$0xff]  ;;  %v4838_v4 = vld [vmem:[#allocation24_spill] sm:$0xff]  ;;  %v4361_v60 = vpop.f32.mrf.mxu0 }
  0xfd   : > { %1909 = vmatpush.bf16.msra.mxu0 %v1079_v16  ;;  %1897 = vmatmul.bf16.vlgmr.msrb.gmra.mxu3 %v4779_v62  ;;  %v4329_v54 = vpack.c.b16 %v1483_v48, %v1479_v19  ;;  %v1359_v14 = vunpack.c.h.b16 %v4092_v55  ;;  %v1363_v53 = vunpack.c.h.b16 %v4825_v58  ;;  %v1471_v40 = vunpack.c.h.b16 %v4826_v13  ;;  %v4830_v55 = vld [vmem:[#allocation17_spill] sm:$0xff]  ;;  %v4839_v48 = vld [vmem:[#allocation11_spill] sm:$0xff]  ;;  %v4840_v42 = vld [vmem:[#allocation12_spill] sm:$0xff] }
  0xfe   : > { %v1071_v10 = vpack.c.b16 %v1027_v3, %v1023_v33  ;;  %v1475_v36 = vunpack.c.h.b16 %v4827_v5  ;;  %1877 = vmatpush.bf16.msrb.mxu2 %v4241_v0  ;;  %v1015_v62 = vunpack.c.h.b16 %v4828_v28  ;;  %v1019_v7 = vunpack.c.h.b16 %v4829_v43  ;;  %v4843_v58 = vld [vmem:[#allocation34_spill] sm:$0xff]  ;;  %v4845_v5 = vld [vmem:[#allocation31_spill] sm:$0xff]  ;;  %v4846_v28 = vld [vmem:[#allocation32_spill] sm:$0xff] }
  0xff   : > { %1965 = vmatpush.bf16.msra.mxu3 %v4329_v54  ;;  %v1239_v20 = vpack.c.b16 %v1203_v56, %v1199_v46  ;;  %v1191_v52 = vunpack.c.h.b16 %v4830_v55  ;;  %v1195_v23 = vunpack.c.h.b16 %v4831_v25  ;;  %v1399_v12 = vpack.c.b16 %v1363_v53, %v1359_v14  ;;  %v4842_v14 = vld [vmem:[#allocation33_spill] sm:$0xff]  ;;  %v4844_v13 = vld [vmem:[#allocation14_spill] sm:$0xff]  ;;  %v2014_v43 = vld [vmem:[%s4622_s4 + $0x10] sm:$0xff] }
 0x100   : > { %1858 = vmatpush.bf16.msrb.mxu1 %v1374_v34  ;;  %v4340_v50 = vpack.c.b16 %v1475_v36, %v1471_v40  ;;  %v1067_v39 = vpack.c.b16 %v1019_v7, %v1015_v62  ;;  %v1463_v0 = vunpack.c.h.b16 %v4156_v21  ;;  %v1467_v24 = vunpack.c.h.b16 %v4164_v59  ;;  %2028 = vperm.xlu0 %2694, %v2014_v43  }
 0x101   : > { %1910 = vmatpush.bf16.msra.mxu0 %v1075_v37  ;;  %1878 = vmatmul.bf16.vlgmr.msrb.gmra.mxu2 %v4832_v61  ;;  %v1351_v27 = vunpack.c.h.b16 %v4139_v57  ;;  %v1355_v18 = vunpack.c.h.b16 %v4833_v63  ;;  %v1007_v8 = vunpack.c.h.b16 %v4834_v6  ;;  %v1011_v30 = vunpack.c.h.b16 %v4835_v9  ;;  %v4837_v57 = vld [vmem:[#allocation23_spill] sm:$0xff]  ;;  %v4850_v6 = vld [vmem:[#allocation45_spill] sm:$0xff]  ;;  %v4851_v9 = vld [vmem:[#allocation46_spill] sm:$0xff] }
 0x102   : > { %1946 = vmatpush.bf16.msra.mxu2 %v1403_v32  ;;  %v4353_v16 = vpack.c.b16 %v1467_v24, %v1463_v0  ;;  %v1235_v21 = vpack.c.b16 %v1195_v23, %v1191_v52  ;;  %v1455_v59 = vunpack.c.h.b16 %v4206_v51  ;;  %v1459_v17 = vunpack.c.h.b16 %v4214_v29  ;;  %v4841_v32 = vld [vmem:[#allocation44_spill] sm:$0xff]  ;;  %v4848_v23 = vld [vmem:[#allocation42_spill] sm:$0xff] }
 0x103   : > { %1859 = vmatmul.bf16.vlgmr.msrb.gmra.mxu1 %v4836_v1  ;;  %1966 = vmatpush.bf16.msra.mxu3 %v4340_v50  ;;  %v1063_v37 = vpack.c.b16 %v1011_v30, %v1007_v8  ;;  %v1187_v19 = vunpack.c.h.b16 %v4838_v4  ;;  %v999_v34 = vunpack.c.h.b16 %v4839_v48  ;;  %v1003_v33 = vunpack.c.h.b16 %v4840_v42  ;;  %v4847_v52 = vld [vmem:[#allocation40_spill] sm:$0xff] }
 0x104   : > { %1927 = vmatpush.bf16.msra.mxu1 %v1243_v41  ;;  %v1183_v41 = vunpack.c.h.b16 %v4837_v57  ;;  %v1395_v3 = vpack.c.b16 %v1355_v18, %v1351_v27  ;;  %v1343_v46 = vunpack.c.h.b16 %v4188_v45  ;;  %v1347_v56 = vunpack.c.h.b16 %v4841_v32 }
 0x105   : > { %1911 = vmatpush.bf16.msra.mxu0 %v1071_v10  ;;  %v4366_v51 = vpack.c.b16 %v1459_v17, %v1455_v59  ;;  %v1059_v29 = vpack.c.b16 %v1003_v33, %v999_v34  ;;  %v991_v10 = vunpack.c.h.b16 %v4842_v14  ;;  %v995_v53 = vunpack.c.h.b16 %v4843_v58  ;;  %v4854_v34 = vld [vmem:[#allocation37_spill] sm:$0xff] }
 0x106   : > { %1947 = vmatpush.bf16.msra.mxu2 %v1399_v12  ;;  %v1231_v40 = vpack.c.b16 %v1187_v19, %v1183_v41  ;;  %v1175_v36 = vunpack.c.h.b16 %v4845_v5  ;;  %v1179_v45 = vunpack.c.h.b16 %v4846_v28  ;;  %v1391_v7 = vpack.c.b16 %v1347_v56, %v1343_v46 }
 0x107   : > { %1967 = vmatpush.bf16.msra.mxu3 %v4353_v16  ;;  %v1055_v62 = vpack.c.b16 %v995_v53, %v991_v10  ;;  %v1339_v55 = vunpack.c.h.b16 %v4244_v26  ;;  %v1167_v12 = vunpack.c.h.b16 %v4848_v23  ;;  %v1327_v63 = vunpack.c.h.b16 %v4272_v31  ;;  %v4387_v26 = vpop.f32.mrf.mxu0  ;;  %v4416_v10 = vpop.permute.xlu1 %1534 }
 0x108   : > { %1928 = vmatpush.bf16.msra.mxu1 %v1239_v20  ;;  %1845 = vmatmul.bf16.gmra.mxu0 %v4844_v13  ;;  %v1335_v20 = vunpack.c.h.b16 %v4237_v35  ;;  %v1227_v25 = vpack.c.b16 %v1179_v45, %v1175_v36  ;;  %v1331_v35 = vunpack.c.h.b16 %v4277_v49  ;;  %v1159_v8 = vunpack.c.h.b16 %v4850_v6  ;;  %v2146_v49 = vld [vmem:[%s4623_s5 + $0x8] sm:$0xff]  ;;  %v4418_v58 = vpop.permute.xlu0 %1544 }
 0x109   : > { %1912 = vmatpush.bf16.msra.mxu0 %v1067_v39  ;;  %v4849_v39 = vld [vmem:[#allocation43_spill] sm:$0xff]  ;;  %v1163_v30 = vunpack.c.h.b16 %v4851_v9  ;;  %v1323_v31 = vunpack.c.h.b16 %v4294_v44  ;;  %v1151_v57 = vunpack.c.h.b16 %v4259_v2  ;;  %v1155_v41 = vunpack.c.h.b16 %v4263_v11  ;;  %2156 = vperm.xlu0 %2694, %v2146_v49   ;;  %v2015_v2 = vld [vmem:[%s4622_s4 + $0x18] sm:$0xff]  ;;  %v2221_v11 = vld [vmem:[#allocation2] sm:$0x1] }
 0x10a   : > { %1948 = vmatpush.bf16.msra.mxu2 %v1395_v3  ;;  %v1171_v0 = vunpack.c.h.b16 %v4849_v39  ;;  %v1387_v27 = vpack.c.b16 %v1339_v55, %v1335_v20  ;;  %v1383_v59 = vpack.c.b16 %v1331_v35, %v1327_v63  ;;  %v1315_v44 = vunpack.c.h.b16 %v4310_v47  ;;  %2033 = vperm.xlu1 %2695, %v2015_v2   ;;  %v2012_v2 = vld [vmem:[%s4622_s4] sm:$0xff] }
 0x10b   : > { %1968 = vmatpush.bf16.msra.mxu3 %v4366_v51  ;;  %v4382_v24 = vpop.f32.mrf.mxu1  ;;  %v1219_v17 = vpack.c.b16 %v1163_v30, %v1159_v8  ;;  %2018 = vperm.xlu2 %2696, %v2012_v2  }
 0x10c   : > { %1929 = vmatpush.bf16.msra.mxu1 %v1235_v21  ;;  %v1223_v18 = vpack.c.b16 %v1171_v0, %v1167_v12  ;;  %v4852_v21 = vld [vmem:[#allocation21_spill] sm:$0xff] }
 0x10d   : > { %1913 = vmatpush.bf16.msra.mxu0 %v1063_v37  ;;  %1902 = vmatmul.bf16.gmra.mxu3 %v4847_v52  ;;  %v4853_v37 = vld [vmem:[#allocation15_spill] sm:$0xff] }
 0x10e   : > { %1949 = vmatpush.bf16.msra.mxu2 %v1391_v7  ;;  %v1614_v7 = vadd.f32 %v4361_v60, %v4416_v10 }
 0x10f   : > { %1969 = vmatpush.bf16.msra.mxu3 %v4329_v54  ;;  %v1319_v54 = vunpack.c.h.b16 %v4289_v15  ;;  %v1311_v15 = vunpack.c.h.b16 %v4307_v38  ;;  %v4424_v36 = vpop.permute.xlu1 %1539 }
 0x110   : > { %1930 = vmatpush.bf16.msra.mxu1 %v1231_v40  ;;  %v1616_v55 = vadd.f32 %v4387_v26, %v4424_v36 }
 0x111   : > { %1914 = vmatpush.bf16.msra.mxu0 %v1059_v29  ;;  %1883 = vmatmul.bf16.gmra.mxu2 %v4852_v21  ;;  %v1379_v19 = vpack.c.b16 %v1323_v31, %v1319_v54  ;;  %v1375_v3 = vpack.c.b16 %v1315_v44, %v1311_v15  ;;  %v4855_v29 = vld [vmem:[#allocation13_spill] sm:$0xff] }
 0x112   : > { %1950 = vmatpush.bf16.msra.mxu2 %v1387_v27  ;;  %2224 = vperm.xlu0 %2694, %v2221_v11  }
 0x113   : > { %1864 = vmatmul.bf16.gmra.mxu1 %v4853_v37  ;;  %1970 = vmatpush.bf16.msra.mxu3 %v4340_v50  ;;  %v1634_v4 = vpop.f32.mrf.mxu1  ;;  %v1215_v50 = vpack.c.b16 %v1155_v41, %v1151_v57 }
 0x114   : > { %1931 = vmatpush.bf16.msra.mxu1 %v1227_v25  ;;  %v1651_v48 = vpop.f32.mrf.mxu2  ;;  %v1618_v33 = vpop.f32.mrf.mxu0  ;;  %v1633_v25 = vadd.f32 %v4382_v24, %v1614_v7  ;;  %v1635_v23 = vadd.f32 %v1634_v4, %v1616_v55 }
 0x115   : > { %1915 = vmatpush.bf16.msra.mxu0 %v1055_v62  ;;  %v4428_v62 = vpop.permute.xlu0 %1549 }
 0x116   : > { %1951 = vmatpush.bf16.msra.mxu2 %v1383_v59  ;;  %v1670_v42 = vpop.f32.mrf.mxu3  ;;  %v1652_v6 = vadd.f32 %v1651_v48, %v1633_v25  ;;  %v4441_v48 = vld [vmem:[%s4621_s3] sm:$0xff] }
 0x117   : > { %1971 = vmatpush.bf16.msra.mxu3 %v4353_v16  ;;  %v2147_v16 = vld [vmem:[%s4623_s5 + $0x10] sm:$0xff] }
 0x118   : > { %1932 = vmatpush.bf16.msra.mxu1 %v1223_v18  ;;  %1916 = vmatmul.bf16.vlgmr.msra.gmra.mxu0 %v4854_v34  ;;  %v1671_v26 = vadd.f32 %v1670_v42, %v1652_v6 }
 0x119   : > { %2161 = vperm.xlu1 %2695, %v2147_v16  }
 0x11a   : > { %1952 = vmatpush.bf16.msra.mxu2 %v1379_v19 }
 0x11b   : > { %1972 = vmatpush.bf16.msra.mxu3 %v4366_v51  ;;  %v1637_v38 = vpop.f32.mrf.mxu1 }
 0x11c   : > { %1933 = vmatpush.bf16.msra.mxu1 %v1219_v17  ;;  %v1653_v47 = vpop.f32.mrf.mxu2  ;;  %v1620_v32 = vpop.f32.mrf.mxu0 }
 0x11d   : > { %v1654_v0 = vadd.f32 %v1653_v47, %v1635_v23 }
 0x11e   : > { %1953 = vmatpush.bf16.msra.mxu2 %v1375_v3  ;;  %1973 = vmatmul.bf16.vlgmr.msra.gmra.mxu3 %v4832_v61  ;;  %v1672_v46 = vpop.f32.mrf.mxu3 }
 0x11f   : > { %v1673_v60 = vadd.f32 %v1672_v46, %v1654_v0  ;;  %v4456_v46 = vld [vmem:[%s4621_s3 + $0x8] sm:$0xff]  ;;  %v2145_v0 = vld [vmem:[%s4623_s5] sm:$0xff] }
 0x120   : > { %1934 = vmatpush.bf16.msra.mxu1 %v1215_v50 }
 0x121   : > { %1954 = vmatmul.bf16.vlgmr.msra.gmra.mxu2 %v4836_v1  ;;  %v1619_v1 = vadd.f32 %v1618_v33, %v4418_v58 }
 0x123   : > { %1935 = vmatmul.bf16.vlgmr.msra.gmra.mxu1 %v4822_v22  ;;  %v1639_v56 = vpop.f32.mrf.mxu1  ;;  %v1638_v20 = vadd.f32 %v1637_v38, %v1619_v1 }
 0x124   : > { %v1656_v51 = vpop.f32.mrf.mxu2 }
 0x125   : > { %v1657_v12 = vadd.f32 %v1656_v51, %v1638_v20 }
 0x126   : > { %v1675_v14 = vpop.f32.mrf.mxu3 }
 0x127   : > { %v1676_v8 = vadd.f32 %v1675_v14, %v1657_v12 }
 0x128   : > { %1921 = vmatmul.bf16.gmra.mxu0 %v4855_v29 }
 0x12a   : > { %v1689_v61 = vpop.f32.mrf.mxu0 }
 0x12b   : > { %v1690_v54 = vadd.f32 %v1689_v61, %v1671_v26  ;;  %v2013_v61 = vld [vmem:[%s4622_s4 + $0x8] sm:$0xff] }
 0x12c   : > { %v1658_v53 = vpop.f32.mrf.mxu2  ;;  %2023 = vperm.xlu2 %2696, %v2013_v61  }
 0x12d   : > { %v1708_v40 = vpop.f32.mrf.mxu1  ;;  %v1984_v19 = vmax.f32 %v1690_v54, 0.0 }
 0x12e   : > { %1978 = vmatmul.bf16.gmra.mxu3 %v4852_v21  ;;  %v1677_v5 = vpop.f32.mrf.mxu3 }
 0x131   : > { %1959 = vmatmul.bf16.gmra.mxu2 %v4853_v37 }
 0x132   : > { %v1691_v22 = vpop.f32.mrf.mxu0 }
 0x133   : > { %1940 = vmatmul.bf16.gmra.mxu1 %v4844_v13  ;;  %v1621_v13 = vadd.f32 %v1620_v32, %v4428_v62  ;;  %v1692_v37 = vadd.f32 %v1691_v22, %v1673_v60  ;;  %v1709_v32 = vadd.f32 %v1708_v40, %v4416_v10 }
 0x134   : > { %2151 = vperm.xlu2 %2696, %v2145_v0  }
 0x135   : > { %v4426_v28 = vpop.f32.mrf.mxu2  ;;  %v1710_v45 = vpop.f32.mrf.mxu1  ;;  %v1640_v39 = vadd.f32 %v1639_v56, %v1621_v13  ;;  %v1988_v41 = vmax.f32 %v1692_v37, 0.0 }
 0x136   : > { %v4430_v43 = vpop.f32.mrf.mxu3  ;;  %v1711_v56 = vadd.f32 %v1710_v45, %v4424_v36  ;;  %v1728_v1 = vadd.f32 %v4426_v28, %v1709_v32 }
 0x137   : > { %v1659_v27 = vadd.f32 %v1658_v53, %v1640_v39  ;;  %v2000_v44 = vpack.c.bf16 %v1988_v41, %v1984_v19 }
 0x139   : > { %v1678_v9 = vadd.f32 %v1677_v5, %v1659_v27 }
 0x13a   : > { %v1694_v52 = vpop.f32.mrf.mxu0 }
 0x13b   : > { %v1695_v30 = vadd.f32 %v1694_v52, %v1676_v8  ;;  %v1747_v52 = vadd.f32 %v4430_v43, %v1728_v1 }
 0x13d   : > { %v1729_v63 = vpop.f32.mrf.mxu2  ;;  %v1713_v35 = vpop.f32.mrf.mxu1  ;;  %v1992_v31 = vmax.f32 %v1695_v30, 0.0 }
 0x13e   : > { %v1748_v18 = vpop.f32.mrf.mxu3  ;;  %v1714_v38 = vadd.f32 %v1713_v35, %v4418_v58  ;;  %v1730_v53 = vadd.f32 %v1729_v63, %v1711_v56 }
 0x140   : > { %v1749_v45 = vadd.f32 %v1748_v18, %v1730_v53 }
 0x142   : > { %v1696_v21 = vpop.f32.mrf.mxu0 }
 0x143   : > { %v1697_v59 = vadd.f32 %v1696_v21, %v1678_v9 }
 0x145   : > { %v1996_v24 = vmax.f32 %v1697_v59, 0.0  ;;  %v1715_v49 = vpop.f32.mrf.mxu1  ;;  %v2148_v59 = vld [vmem:[%s4623_s5 + $0x18] sm:$0xff] }
 0x146   : > { %v1716_v29 = vadd.f32 %v1715_v49, %v4428_v62  ;;  %2166 = vperm.xlu2 %2696, %v2148_v59  }
 0x147   : > { %v1732_v17 = vpop.f32.mrf.mxu2  ;;  %v2004_v4 = vpack.c.bf16 %v1996_v24, %v1992_v31 }
 0x148   : > { %v1751_v57 = vpop.f32.mrf.mxu3  ;;  %v1733_v51 = vadd.f32 %v1732_v17, %v1714_v38 }
 0x149   : > { %2059 = vmatpush.bf16.msrb.mxu0 %v2004_v4 }
 0x14a   : > { %v1765_v15 = vpop.f32.mrf.mxu0  ;;  %v1752_v40 = vadd.f32 %v1751_v57, %v1733_v51 }
 0x14b   : > { %v1766_v27 = vadd.f32 %v1765_v15, %v1747_v52 }
 0x14d   : > { %2060 = vmatpush.bf16.msrb.mxu0 %v2000_v44 }
 0x14e   : > { %v1784_v34 = vpop.f32.mrf.mxu1 }
 0x14f   : > { %v1734_v42 = vpop.f32.mrf.mxu2  ;;  %v1785_v28 = vadd.f32 %v1784_v34, %v1766_v27 }
 0x150   : > { %v1753_v50 = vpop.f32.mrf.mxu3  ;;  %2593 = vmatmul.msk.bf16.vlgmr.msrb.gmra.mxu0 %vm2046_vm0, %v4441_v48  ;;  %v1735_v5 = vadd.f32 %v1734_v42, %v1716_v29 }
 0x151   : > { %v1985_v30 = vmax.f32 %v1785_v28, 0.0 }
 0x152   : > { %v1767_v33 = vpop.f32.mrf.mxu0  ;;  %v1754_v20 = vadd.f32 %v1753_v50, %v1735_v5 }
 0x153   : > { %v1768_v25 = vadd.f32 %v1767_v33, %v1749_v45 }
 0x156   : > { %v1786_v11 = vpop.f32.mrf.mxu1 }
 0x157   : > { %v4451_v47 = vpop.f32.mrf.mxu2  ;;  %v1787_v63 = vadd.f32 %v1786_v11, %v1768_v25 }
 0x158   : > { %v4448_v3 = vpop.f32.mrf.mxu3  ;;  %v1804_v11 = vadd.f32 %v4451_v47, %v4416_v10 }
 0x159   : > { %v1989_v60 = vmax.f32 %v1787_v63, 0.0 }
 0x15a   : > { %v1823_v61 = vadd.f32 %v4448_v3, %v1804_v11 }
 0x15b   : > { %v2001_v21 = vpack.c.bf16 %v1989_v60, %v1985_v30 }
 0x15c   : > { %v1770_v16 = vpop.f32.mrf.mxu0 }
 0x15d   : > { %v1771_v55 = vadd.f32 %v1770_v16, %v1752_v40 }
 0x15e   : > { %v1789_v14 = vpop.f32.mrf.mxu1 }
 0x15f   : > { %v1805_v13 = vpop.f32.mrf.mxu2  ;;  %v1790_v12 = vadd.f32 %v1789_v14, %v1771_v55 }
 0x160   : > { %v1824_v22 = vpop.f32.mrf.mxu3  ;;  %2594 = vmatmul.msk.bf16.gmra.mxu0 %vm2046_vm0, %v4456_v46  ;;  %v1806_v42 = vadd.f32 %v1805_v13, %v4424_v36 }
 0x161   : > { %v1993_v6 = vmax.f32 %v1790_v12, 0.0 }
 0x162   : > { %v1825_v16 = vadd.f32 %v1824_v22, %v1806_v42 }
 0x164   : > { %v1772_v7 = vpop.f32.mrf.mxu0 }
 0x165   : > { %v1773_v23 = vadd.f32 %v1772_v7, %v1754_v20 }
 0x166   : > { %v1791_v39 = vpop.f32.mrf.mxu1 }
 0x167   : > { %v1792_v35 = vadd.f32 %v1791_v39, %v1773_v23  ;;  %v1808_v43 = vpop.f32.mrf.mxu2 }
 0x168   : > { %v1809_v50 = vadd.f32 %v1808_v43, %v4418_v58 }
 0x169   : > { %v1827_v18 = vpop.f32.mrf.mxu3  ;;  %v1997_v8 = vmax.f32 %v1792_v35, 0.0 }
 0x16a   : > { %v1828_v38 = vadd.f32 %v1827_v18, %v1809_v50 }
 0x16b   : > { %v2005_v9 = vpack.c.bf16 %v1997_v8, %v1993_v6 }
 0x16d   : > { %2078 = vmatpush.bf16.msrb.mxu1 %v2005_v9 }
 0x16f   : > { %v1810_v54 = vpop.f32.mrf.mxu2 }
 0x170   : > { %v1811_v33 = vadd.f32 %v1810_v54, %v4428_v62 }
 0x171   : > { %2079 = vmatpush.bf16.msrb.mxu1 %v2001_v21  ;;  %v1829_v37 = vpop.f32.mrf.mxu3 }
 0x172   : > { %v1830_v32 = vadd.f32 %v1829_v37, %v1811_v33 }
 0x174   : > { %2595 = vmatmul.msk.bf16.vlgmr.msrb.gmra.mxu1 %vm2046_vm0, %v4441_v48 }
 0x175   : > { %v1841_v26 = vpop.f32.mrf.mxu0 }
 0x176   : > { %v1842_v40 = vadd.f32 %v1841_v26, %v1823_v61 }
 0x17d   : > { %v1843_v31 = vpop.f32.mrf.mxu0 }
 0x17e   : > { %v1844_v53 = vadd.f32 %v1843_v31, %v1825_v16 }
 0x180   : > { %v1860_v24 = vpop.f32.mrf.mxu1  ;;  %v1898_v49 = vpop.f32.mrf.mxu3 }
 0x181   : > { %v1861_v13 = vadd.f32 %v1860_v24, %v1842_v40  ;;  %v1899_v54 = vadd.f32 %v1898_v49, %v4416_v10 }
 0x184   : > { %v1879_v17 = vpop.f32.mrf.mxu2  ;;  %2596 = vmatmul.msk.bf16.gmra.mxu1 %vm2046_vm0, %v4456_v46 }
 0x185   : > { %v1846_v57 = vpop.f32.mrf.mxu0  ;;  %v1880_v25 = vadd.f32 %v1879_v17, %v1861_v13  ;;  %v4502_v13 = vpop.permute.xlu1 %2033 }
 0x186   : > { %v1847_v56 = vadd.f32 %v1846_v57, %v1828_v38 }
 0x187   : > { %v1986_v3 = vmax.f32 %v1880_v25, 0.0 }
 0x188   : > { %v1862_v41 = vpop.f32.mrf.mxu1  ;;  %v1900_v4 = vpop.f32.mrf.mxu3 }
 0x189   : > { %v1863_v7 = vadd.f32 %v1862_v41, %v1844_v53  ;;  %v1901_v26 = vadd.f32 %v1900_v4, %v4424_v36  ;;  %v4496_v53 = vpop.permute.xlu2 %2018 }
 0x18c   : > { %v1881_v19 = vpop.f32.mrf.mxu2 }
 0x18d   : > { %v1848_v15 = vpop.f32.mrf.mxu0  ;;  %v1882_v52 = vadd.f32 %v1881_v19, %v1863_v7 }
 0x18e   : > { %v1849_v5 = vadd.f32 %v1848_v15, %v1830_v32 }
 0x18f   : > { %v1990_v39 = vmax.f32 %v1882_v52, 0.0 }
 0x190   : > { %v1865_v44 = vpop.f32.mrf.mxu1  ;;  %v1903_v34 = vpop.f32.mrf.mxu3 }
 0x191   : > { %v1866_v1 = vadd.f32 %v1865_v44, %v1847_v56  ;;  %v2002_v28 = vpack.c.bf16 %v1990_v39, %v1986_v3  ;;  %v1904_v30 = vadd.f32 %v1903_v34, %v4418_v58  ;;  %v4498_v7 = vpop.permute.xlu2 %2023 }
 0x194   : > { %v1884_v2 = vpop.f32.mrf.mxu2 }
 0x195   : > { %v1917_v14 = vpop.f32.mrf.mxu0  ;;  %v1885_v45 = vadd.f32 %v1884_v2, %v1866_v1 }
 0x196   : > { %v1918_v41 = vadd.f32 %v1917_v14, %v1899_v54 }
 0x197   : > { %v1994_v22 = vmax.f32 %v1885_v45, 0.0 }
 0x198   : > { %v1867_v51 = vpop.f32.mrf.mxu1  ;;  %v1905_v29 = vpop.f32.mrf.mxu3 }
 0x199   : > { %v1868_v20 = vadd.f32 %v1867_v51, %v1849_v5  ;;  %v1906_v31 = vadd.f32 %v1905_v29, %v4428_v62  ;;  %v4507_v25 = vpop.permute.xlu2 %2151 }
 0x19c   : > { %v1886_v55 = vpop.f32.mrf.mxu2 }
 0x19d   : > { %v1887_v47 = vadd.f32 %v1886_v55, %v1868_v20  ;;  %v1919_v63 = vpop.f32.mrf.mxu0  ;;  %v4500_v20 = vpop.permute.xlu0 %2028 }
 0x19e   : > { %v1920_v24 = vadd.f32 %v1919_v63, %v1901_v26  ;;  %v4520_v26 = vpop.permute.xlu1 %2161 }
 0x19f   : > { %v1998_v23 = vmax.f32 %v1887_v47, 0.0 }
 0x1a0   : > { %v1936_v12 = vpop.f32.mrf.mxu1 }
 0x1a1   : > { %v2006_v0 = vpack.c.bf16 %v1998_v23, %v1994_v22  ;;  %v1974_v27 = vpop.f32.mrf.mxu3  ;;  %v1937_v58 = vadd.f32 %v1936_v12, %v1918_v41 }
 0x1a3   : > { %2097 = vmatpush.bf16.msrb.mxu2 %v2006_v0 }
 0x1a4   : > { %v1955_v35 = vpop.f32.mrf.mxu2 }
 0x1a5   : > { %v1922_v8 = vpop.f32.mrf.mxu0  ;;  %v1956_v4 = vadd.f32 %v1955_v35, %v1937_v58 }
 0x1a6   : > { %v1923_v37 = vadd.f32 %v1922_v8, %v1904_v30 }
 0x1a7   : > { %2098 = vmatpush.bf16.msrb.mxu2 %v2002_v28  ;;  %v1975_v2 = vadd.f32 %v1974_v27, %v1956_v4 }
 0x1a8   : > { %v1938_v6 = vpop.f32.mrf.mxu1 }
 0x1a9   : > { %v1976_v18 = vpop.f32.mrf.mxu3  ;;  %v1939_v19 = vadd.f32 %v1938_v6, %v1920_v24  ;;  %v1987_v56 = vmax.f32 %v1975_v2, 0.0 }
 0x1aa   : > { %2597 = vmatmul.msk.bf16.vlgmr.msrb.gmra.mxu2 %vm2046_vm0, %v4441_v48 }
 0x1ac   : > { %v1957_v60 = vpop.f32.mrf.mxu2 }
 0x1ad   : > { %v1924_v59 = vpop.f32.mrf.mxu0  ;;  %v1958_v34 = vadd.f32 %v1957_v60, %v1939_v19 }
 0x1ae   : > { %v1925_v15 = vadd.f32 %v1924_v59, %v1906_v31 }
 0x1af   : > { %v1977_v49 = vadd.f32 %v1976_v18, %v1958_v34  ;;  %v4515_v18 = vpop.permute.xlu0 %2156 }
 0x1b0   : > { %v1941_v9 = vpop.f32.mrf.mxu1 }
 0x1b1   : > { %v1979_v21 = vpop.f32.mrf.mxu3  ;;  %v1942_v17 = vadd.f32 %v1941_v9, %v1923_v37  ;;  %v1991_v16 = vmax.f32 %v1977_v49, 0.0 }
 0x1b3   : > { %v2003_v51 = vpack.c.bf16 %v1991_v16, %v1987_v56 }
 0x1b4   : > { %v1960_v43 = vpop.f32.mrf.mxu2 }
 0x1b5   : > { %v1961_v44 = vadd.f32 %v1960_v43, %v1942_v17 }
 0x1b7   : > { %v1980_v42 = vadd.f32 %v1979_v21, %v1961_v44 }
 0x1b8   : > { %v1943_v57 = vpop.f32.mrf.mxu1 }
 0x1b9   : > { %v1944_v50 = vadd.f32 %v1943_v57, %v1925_v15  ;;  %v1981_v10 = vpop.f32.mrf.mxu3  ;;  %v1995_v11 = vmax.f32 %v1980_v42, 0.0  ;;  %v4524_v57 = vpop.permute.xlu2 %2166 }
 0x1ba   : > { %2598 = vmatmul.msk.bf16.gmra.mxu2 %vm2046_vm0, %v4456_v46 }
 0x1bc   : > { %v1962_v36 = vpop.f32.mrf.mxu2 }
 0x1bd   : > { %v1963_v33 = vadd.f32 %v1962_v36, %v1944_v50 }
 0x1bf   : > { %v1982_v62 = vadd.f32 %v1981_v10, %v1963_v33 }
 0x1c1   : > { %v1999_v38 = vmax.f32 %v1982_v62, 0.0 }
 0x1c3   : > { %v2007_v32 = vpack.c.bf16 %v1999_v38, %v1995_v11 }
 0x1c5   : > { %2116 = vmatpush.bf16.msrb.mxu3 %v2007_v32 }
 0x1c9   : > { %2117 = vmatpush.bf16.msrb.mxu3 %v2003_v51 }
 0x1cc   : > { %2599 = vmatmul.msk.bf16.vlgmr.msrb.gmra.mxu3 %vm2046_vm0, %v4441_v48 }
 0x1cd   : > { %v2062_v14 = vpop.f32.mrf.mxu0 }
 0x1ce   : > { %v2063_v27 = vadd.f32 %v2062_v14, %v4496_v53 }
 0x1d0   : > { %v2129_v37 = vmax.f32 %v2063_v27, 0.0 }
 0x1d2   : > { %v2169_v34 = vmul.f32 %v4507_v25, %v2129_v37 }
 0x1d5   : > { %v2064_v5 = vpop.f32.mrf.mxu0 }
 0x1d6   : > { %v2065_v63 = vadd.f32 %v2064_v5, %v4498_v7 }
 0x1d8   : > { %v2133_v59 = vmax.f32 %v2065_v63, 0.0  ;;  %v2225_v63 = vpop.permute.xlu0 %2224 }
 0x1da   : > { %v2173_v58 = vmul.f32 %v4515_v18, %v2133_v59 }
 0x1dc   : > { %2600 = vmatmul.msk.bf16.gmra.mxu3 %vm2046_vm0, %v4456_v46  ;;  %v2185_v11 = vadd.f32 %v2173_v58, %v2169_v34  ;;  %vm2315_vm0 = vcmask 1040384  }
 0x1dd   : > { %v2067_v45 = vpop.f32.mrf.mxu0 }
 0x1de   : > { %v2068_v8 = vadd.f32 %v2067_v45, %v4500_v20 }
 0x1e0   : > { %v2137_v17 = vmax.f32 %v2068_v8, 0.0 }
 0x1e2   : > { %v2177_v10 = vmul.f32 %v4520_v26, %v2137_v17 }
 0x1e4   : > { %v2186_v56 = vadd.f32 %v2185_v11, %v2177_v10 }
 0x1e5   : > { %v2069_v35 = vpop.f32.mrf.mxu0 }
 0x1e6   : > { %v2070_v54 = vadd.f32 %v2069_v35, %v4502_v13 }
 0x1e8   : > { %v2141_v50 = vmax.f32 %v2070_v54, 0.0 }
 0x1ea   : > { %v2181_v38 = vmul.f32 %v4524_v57, %v2141_v50 }
 0x1ec   : > { %v2187_v14 = vadd.f32 %v2186_v56, %v2181_v38 }
 0x1f1   : > { %v2081_v29 = vpop.f32.mrf.mxu1 }
 0x1f2   : > { %v2082_v48 = vadd.f32 %v2081_v29, %v4496_v53 }
 0x1f4   : > { %v2130_v22 = vmax.f32 %v2082_v48, 0.0 }
 0x1f6   : > { %v2170_v60 = vmul.f32 %v4507_v25, %v2130_v22 }
 0x1f9   : > { %v2083_v61 = vpop.f32.mrf.mxu1 }
 0x1fa   : > { %v2084_v46 = vadd.f32 %v2083_v61, %v4498_v7 }
 0x1fc   : > { %v2134_v23 = vmax.f32 %v2084_v46, 0.0 }
 0x1fe   : > { %v2174_v9 = vmul.f32 %v4515_v18, %v2134_v23 }
 0x200   : > { %v2194_v41 = vadd.f32 %v2174_v9, %v2170_v60  ;;  %v2227_v60 = vperm.slane %v2225_v63, 0 }
 0x201   : > { %v2086_v40 = vpop.f32.mrf.mxu1 }
 0x202   : > { %v2087_v47 = vadd.f32 %v2086_v40, %v4500_v20  ;;  %v2188_v40 = vrot.slane %v2187_v14, 4 }
 0x204   : > { %v2138_v28 = vmax.f32 %v2087_v47, 0.0  ;;  %v2189_v48 = vadd.f32 %v2188_v40, %v2187_v14 }
 0x206   : > { %v2178_v31 = vmul.f32 %v4520_v26, %v2138_v28  ;;  %v2190_v22 = vrot.slane %v2189_v48, 2 }
 0x208   : > { %v2195_v4 = vadd.f32 %v2194_v41, %v2178_v31 }
 0x209   : > { %v2088_v52 = vpop.f32.mrf.mxu1 }
 0x20a   : > { %v2089_v12 = vadd.f32 %v2088_v52, %v4502_v13 }
 0x20c   : > { %v2142_v30 = vmax.f32 %v2089_v12, 0.0 }
 0x20e   : > { %v2182_v19 = vmul.f32 %v4524_v57, %v2142_v30 }
 0x210   : > { %v2196_v49 = vadd.f32 %v2195_v4, %v2182_v19 }
 0x212   : > { %v2197_v51 = vrot.slane %v2196_v49, 4 }
 0x22d   : > { %v2100_v1 = vpop.f32.mrf.mxu2 }
 0x22e   : > { %v2101_v39 = vadd.f32 %v2100_v1, %v4496_v53  ;;  %v2198_v1 = vadd.f32 %v2197_v51, %v2196_v49 }
 0x230   : > { %v2131_v43 = vmax.f32 %v2101_v39, 0.0  ;;  %v2191_v39 = vadd.f32 %v2190_v22, %v2189_v48 }
 0x232   : > { %v2171_v15 = vmul.f32 %v4507_v25, %v2131_v43  ;;  %v2192_v8 = vrot.slane %v2191_v39, 1 }
 0x234   : > { %v2193_v59 = vadd.f32 %v2192_v8, %v2191_v39 }
 0x235   : > { %v2102_v55 = vpop.f32.mrf.mxu2 }
 0x236   : > { %v2103_v0 = vadd.f32 %v2102_v55, %v4498_v7  ;;  %v2199_v55 = vrot.slane %v2198_v1, 2 }
 0x238   : > { %v2135_v21 = vmax.f32 %v2103_v0, 0.0  ;;  %v2200_v47 = vadd.f32 %v2199_v55, %v2198_v1 }
 0x23a   : > { %v2175_v44 = vmul.f32 %v4515_v18, %v2135_v21  ;;  %v2201_v12 = vrot.slane %v2200_v47, 1 }
 0x23c   : > { %v2203_v62 = vadd.f32 %v2175_v44, %v2171_v15  ;;  %v2202_v35 = vadd.f32 %v2201_v12, %v2200_v47 }
 0x23d   : > { %v2105_v3 = vpop.f32.mrf.mxu2 }
 0x23e   : > { %v2106_v6 = vadd.f32 %v2105_v3, %v4500_v20  ;;  %v2229_v43 = vadd.f32 %v2227_v60, %v2202_v35 }
 0x240   : > { %v2139_v24 = vmax.f32 %v2106_v6, 0.0 }
 0x242   : > { %v2179_v42 = vmul.f32 %v4520_v26, %v2139_v24 }
 0x244   : > { %v2204_v16 = vadd.f32 %v2203_v62, %v2179_v42 }
 0x245   : > { %v2107_v36 = vpop.f32.mrf.mxu2 }
 0x246   : > { %v2108_v33 = vadd.f32 %v2107_v36, %v4502_v13 }
 0x248   : > { %v2143_v2 = vmax.f32 %v2108_v33, 0.0 }
 0x24a   : > { %v2183_v32 = vmul.f32 %v4524_v57, %v2143_v2 }
 0x24c   : > { %v2205_v29 = vadd.f32 %v2204_v16, %v2183_v32 }
 0x24e   : > { %v2206_v61 = vrot.slane %v2205_v29, 4 }
 0x24f   : > { %v2119_v5 = vpop.f32.mrf.mxu3 }
 0x250   : > { %v2207_v45 = vadd.f32 %v2206_v61, %v2205_v29  ;;  %v2120_v28 = vadd.f32 %v2119_v5, %v4496_v53 }
 0x252   : > { %v2208_v46 = vrot.slane %v2207_v45, 2  ;;  %v2132_v21 = vmax.f32 %v2120_v28, 0.0 }
 0x254   : > { %v2209_v23 = vadd.f32 %v2208_v46, %v2207_v45  ;;  %v2172_v17 = vmul.f32 %v4507_v25, %v2132_v21 }
 0x256   : > { %v2210_v0 = vrot.slane %v2209_v23, 1 }
 0x257   : > { %v2121_v52 = vpop.f32.mrf.mxu3 }
 0x258   : > { %v2122_v27 = vadd.f32 %v2121_v52, %v4498_v7  ;;  %v2211_v9 = vadd.f32 %v2210_v0, %v2209_v23  ;;  %v2602_v7 = vmul.f32 -1.442695, %v2229_v43 }
 0x25a   : > { %v2136_v30 = vmax.f32 %v2122_v27, 0.0  ;;  %v2230_v54 = vadd.f32 %v2227_v60, %v2211_v9  ;;  %2697 = vpow2.f32 %v2602_v7 }
 0x25c   : > { %v2176_v31 = vmul.f32 %v4515_v18, %v2136_v30  ;;  %v2603_v19 = vmul.f32 -1.442695, %v2230_v54 }
 0x25e   : > { %v2212_v15 = vadd.f32 %v2176_v31, %v2172_v17  ;;  %2699 = vpow2.f32 %v2603_v19 }
 0x25f   : > { %v2124_v3 = vpop.f32.mrf.mxu3 }
 0x260   : > { %v2125_v6 = vadd.f32 %v2124_v3, %v4500_v20  ;;  %v2228_v20 = vadd.f32 %v2227_v60, %v2193_v59  ;;  %v2698_v4 = vpop.eup %2697 }
 0x262   : > { %v2140_v37 = vmax.f32 %v2125_v6, 0.0  ;;  %v2601_v50 = vmul.f32 -1.442695, %v2228_v20 }
 0x264   : > { %v2180_v41 = vmul.f32 %v4520_v26, %v2140_v37  ;;  %2701 = vpow2.f32 %v2601_v50  ;;  %v2700_v25 = vpop.eup %2699  ;;  %v2245_v26 = vadd.f32 1.0, %v2698_v4 }
 0x265   : > { %v2246_v49 = vadd.f32 1.0, %v2700_v25 }
 0x266   : > { %v2213_v58 = vadd.f32 %v2212_v15, %v2180_v41  ;;  %2703 = vrcp.f32 %v2245_v26  ;;  %v2272_v22 = vand.u32 2147483647, %v2245_v26  ;;  %v2274_v23 = vand.u32 2147483648, %v2245_v26 }
 0x267   : > { %v2126_v24 = vpop.f32.mrf.mxu3  ;;  %2705 = vrcp.f32 %v2246_v49  ;;  %vm2268_vm2 = vweird.f32 %v2245_v26  ;;  %v2289_v27 = vand.u32 2147483648, %v2246_v49  ;;  %vm2283_vm6 = vweird.f32 %v2246_v49 }
 0x268   : > { %v2127_v53 = vadd.f32 %v2126_v24, %v4502_v13  ;;  %v2287_v3 = vand.u32 2147483647, %v2246_v49  ;;  %vm2273_vm7 = vcmp.eq.f32.partialorder %v2272_v22, 8.507059e+37  ;;  %v2275_v6 = vor.u32 1.1754944e-38, %v2274_v23 }
 0x269   : > { %v2290_v59 = vor.u32 1.1754944e-38, %v2289_v27  ;;  %v2322_v41 = vlaneseq }
 0x26a   : > { %v2144_v44 = vmax.f32 %v2127_v53, 0.0  ;;  %v2702_v13 = vpop.eup %2701  ;;  %vm2288_vm12 = vcmp.eq.f32.partialorder %v2287_v3, 8.507059e+37 }
 0x26b   : > { %v4544_v2 = vadd.f32 1.0, %v2702_v13 }
 0x26c   : > { %v2184_v34 = vmul.f32 %v4524_v57, %v2144_v44  ;;  %v2704_v16 = vpop.eup %2703 }
 0x26d   : > { %2707 = vrcp.f32 %v4544_v2  ;;  %v2706_v32 = vpop.eup %2705  ;;  %v2264_v56 = vmul.f32 %v2704_v16, %v2245_v26  ;;  %vm2269_vm1 = vweird.f32 %v2704_v16  ;;  %vm2253_vm10 = vweird.f32 %v4544_v2 }
 0x26e   : > { %v2214_v36 = vadd.f32 %v2213_v58, %v2184_v34  ;;  %v2279_v29 = vmul.f32 %v2706_v32, %v2246_v49  ;;  %vm2284_vm3 = vweird.f32 %v2706_v32  ;;  %vm4553_vm5 = vmor %vm2268_vm2, %vm2269_vm1  ;;  %v2259_v21 = vand.u32 2147483648, %v4544_v2 }
 0x26f   : > { %v2265_v61 = vsub.f32 1.0, %v2264_v56  ;;  %vm4561_vm8 = vmor %vm2283_vm6, %vm2284_vm3  ;;  %v2257_v31 = vand.u32 2147483647, %v4544_v2  ;;  %vm2317_vm1 = vcmask 1042434   ;;  %vm2319_vm3 = vcmask 1041408  }
 0x270   : > { %v2215_v18 = vrot.slane %v2214_v36, 4  ;;  %v2280_v40 = vsub.f32 1.0, %v2279_v29  ;;  %v2260_v15 = vor.u32 1.1754944e-38, %v2259_v21 }
 0x271   : > { %v2266_v45 = vmul.f32 %v2704_v16, %v2265_v61  ;;  %vm2258_vm2 = vcmp.eq.f32.partialorder %v2257_v31, 8.507059e+37 }
 0x272   : > { %v2216_v42 = vadd.f32 %v2215_v18, %v2214_v36  ;;  %v2281_v48 = vmul.f32 %v2706_v32, %v2280_v40 }
 0x273   : > { %v4547_v51 = vpop.eup %2707  ;;  %v2267_v46 = vadd.f32 %v2704_v16, %v2266_v45 }
 0x274   : > { %v2217_v33 = vrot.slane %v2216_v42, 2  ;;  %v2249_v1 = vmul.f32 %v4547_v51, %v4544_v2  ;;  %v2282_v12 = vadd.f32 %v2706_v32, %v2281_v48  ;;  %vm2254_vm4 = vweird.f32 %v4547_v51 }
 0x275   : > { %v2271_v63 = vsel %vm4553_vm5, %v2704_v16, %v2267_v46  ;;  %vm4575_vm11 = vmor %vm2253_vm10, %vm2254_vm4  ;;  %vm2324_vm4 = vcmp.lt.s32.totalorder %v2322_v41, 512 }
 0x276   : > { %v2218_v10 = vadd.f32 %v2217_v33, %v2216_v42  ;;  %v2250_v55 = vsub.f32 1.0, %v2249_v1  ;;  %v2286_v9 = vsel %vm4561_vm8, %v2706_v32, %v2282_v12  ;;  %v2276_v37 = vsel %vm2273_vm7, %v2275_v6, %v2271_v63 }
 0x277   : > { %v2291_v7 = vsel %vm2288_vm12, %v2290_v59, %v2286_v9  ;;  %v2312_v19 = vrot.slane %v2276_v37, 7 }
 0x278   : > { %v2219_v62 = vrot.slane %v2218_v10, 1  ;;  %v2251_v47 = vmul.f32 %v4547_v51, %v2250_v55  ;;  %v2313_v58 = vrot.slane %v2291_v7, 6 }
 0x27a   : > { %v2220_v11 = vadd.f32 %v2219_v62, %v2218_v10  ;;  %v2252_v28 = vadd.f32 %v4547_v51, %v2251_v47 }
 0x27c   : > { %v2231_v57 = vadd.f32 %v2227_v60, %v2220_v11  ;;  %v2256_v53 = vsel %vm4575_vm11, %v4547_v51, %v2252_v28 }
 0x27d   : > { %v2261_v50 = vsel %vm2258_vm2, %v2260_v15, %v2256_v53 }
 0x27e   : > { %v2604_v38 = vmul.f32 -1.442695, %v2231_v57  ;;  %v2316_v36 = vsel %vm2315_vm0, %v2261_v50, %v2312_v19 }
 0x280   : > { %2709 = vpow2.f32 %v2604_v38 }
 0x286   : > { %v2710_v14 = vpop.eup %2709 }
 0x287   : > { %v2247_v5 = vadd.f32 1.0, %v2710_v14 }
 0x289   : > { %2711 = vrcp.f32 %v2247_v5  ;;  %v2304_v60 = vand.u32 2147483648, %v2247_v5  ;;  %v2302_v43 = vand.u32 2147483647, %v2247_v5  ;;  %vm2298_vm13 = vweird.f32 %v2247_v5 }
 0x28b   : > { %v2305_v17 = vor.u32 1.1754944e-38, %v2304_v60  ;;  %vm2303_vm15 = vcmp.eq.f32.partialorder %v2302_v43, 8.507059e+37 }
 0x28f   : > { %v2712_v52 = vpop.eup %2711 }
 0x290   : > { %v2294_v39 = vmul.f32 %v2712_v52, %v2247_v5  ;;  %vm2299_vm9 = vweird.f32 %v2712_v52 }
 0x291   : > { %vm2300_vm14 = vmor %vm2298_vm13, %vm2299_vm9 }
 0x292   : > { %v2295_v35 = vsub.f32 1.0, %v2294_v39 }
 0x294   : > { %v2296_v30 = vmul.f32 %v2712_v52, %v2295_v35 }
 0x296   : > { %v2297_v24 = vadd.f32 %v2712_v52, %v2296_v30 }
 0x298   : > { %v2301_v20 = vsel %vm2300_vm14, %v2712_v52, %v2297_v24 }
 0x299   : > { %v2306_v44 = vsel %vm2303_vm15, %v2305_v17, %v2301_v20 }
 0x29a   : > { %v2314_v34 = vrot.slane %v2306_v44, 5 }
 0x29c   : > { %v2318_v18 = vsel %vm2317_vm1, %v2313_v58, %v2314_v34 }
 0x29d   : > { %v2320_v4 = vsel %vm2319_vm3, %v2316_v36, %v2318_v18 }
 0x29e   : > { %2326 = vst.msk [vmem:[%s360_s14] sm:$0xf] %vm2324_vm4, %v2320_v4 }
 0x29f   : > { %2740 = shalt.err (!%p2737_p5)
}
 0x2a0   : > { %2654 = dma.vmem_to_hbm [thread:$0]  (%p2859_p6), %s2341_s15, 64, %s2343_s16, %s2328_s17  }
 0x2a1 PF: > { %s2354_s21 = sand.u32 1, %s2763_s26   ;;  %p2657_p7 = pnand %p2410_p9, %p2863_p8 }
 0x2a2   : > { %s2355_s30 = scalar_lea.sflag [#allocation5], %s2354_s21 }
 0x2a3   : > { %p2658_p10 = pneg %p2657_p7 }
 0x2a5   : > { %2758 = dma.done.wait (%p2658_p10), %s2355_s30, 64  }
 0x2a6   : > { %2760 = vsyncadd (%p2658_p10), %s2355_s30, 4294967232  ;;  %p19_p11 = scmp.ge.s32.totalorder %s2844_s8, 4   ;;  %s4862_s26 = smov %s2767_s27 }
 0x2a7   : > { %s4863_s27 = smov %s2771_s28  ;;  %s4864_s28 = smov %s2857_s11 }
 0x2a8   : > { %s4865_s29 = smov %s2844_s8  ;;  %21 = sbr.rel (!%p19_p11) target bundleno = 6 (0x6), region = 111 }
 0x2ad   :  { %2361 = vsyncpa [#allocation5], 1 }
 0x2ae   :  { %2363 = vsyncpa [#allocation5 + $0x1], 1 }

</bundles_post_ra>
